<compile_context>
chip_gen: v6e
topology: v6e:2x2x1
jax: 0.10.0
libtpu: 0.0.40
codegen_flags: <defaults>
</compile_context>

<pallas_src>
import jax
import jax.numpy as jnp
from jax import lax
from jax.experimental import pallas as pl
from jax.experimental.pallas import tpu as pltpu


def _head_kernel(x_ref, wq_ref, wk_ref, wv_ref, o_ref):
    # x_ref : (T, C)  bf16   (batch dim squeezed; one batch element per step)
    # w*_ref: (C, H)  bf16   (query weight pre-scaled by H**-0.5)
    # o_ref : (T, H)  x.dtype
    x = x_ref[...]

    # Fused-in projections: three tile-aligned (T, H) results, f32 accumulate.
    q = jnp.dot(x, wq_ref[...], preferred_element_type=jnp.float32)  # scaled
    k = jnp.dot(x, wk_ref[...], preferred_element_type=jnp.float32)
    v = jnp.dot(x, wv_ref[...], preferred_element_type=jnp.float32)

    # Scores: contract the last axes directly (no XLU transpose of k); feed
    # the MXU bf16 operands, accumulate f32.
    s = lax.dot_general(
        q.astype(jnp.bfloat16), k.astype(jnp.bfloat16),
        (((1,), (1,)), ((), ())),
        preferred_element_type=jnp.float32,
    )  # (T, T) f32, already scaled by H**-0.5 via the folded weight

    T = s.shape[0]
    row = lax.broadcasted_iota(jnp.int32, (T, T), 0)
    col = lax.broadcasted_iota(jnp.int32, (T, T), 1)
    s = jnp.where(row >= col, s, jnp.float32(-1e30))  # causal mask

    # Softmax along keys (f32).
    m = jnp.max(s, axis=-1, keepdims=True)
    p = jnp.exp(s - m)
    l = jnp.sum(p, axis=-1, keepdims=True)
    p = p * pl.reciprocal(l, approx=False)

    # TODO(synk): attention-weight dropout omitted (eval-mode identity).

    out = jnp.dot(p.astype(jnp.bfloat16), v.astype(jnp.bfloat16),
                  preferred_element_type=jnp.float32)
    o_ref[...] = out.astype(o_ref.dtype)


def head_forward(x, wq, wk, wv):
    """x: (B, T, C); wq/wk/wv: (H, C) PyTorch-style Linear weights (no bias)."""
    B, T, C = x.shape
    H = wq.shape[0]
    out_dtype = x.dtype

    # Fold the 1/sqrt(H) attention scale into the query projection columns
    # (one-time trace-level op on a (C, H) constant, not per-token work).
    scale = jnp.float32(H) ** -0.5
    wq_t = (wq.astype(jnp.float32).T * scale).astype(jnp.bfloat16)  # (C, H)
    wk_t = wk.T.astype(jnp.bfloat16)                                 # (C, H)
    wv_t = wv.T.astype(jnp.bfloat16)                                 # (C, H)
    x_bf = x.astype(jnp.bfloat16)                                    # (B, T, C)

    return pl.pallas_call(
        _head_kernel,
        out_shape=jax.ShapeDtypeStruct((B, T, H), out_dtype),
        grid=(B,),
        in_specs=[
            pl.BlockSpec((pl.Squeezed(), T, C), lambda b: (b, 0, 0)),
            pl.BlockSpec((C, H), lambda b: (0, 0)),  # invariant: DMA'd once
            pl.BlockSpec((C, H), lambda b: (0, 0)),  # invariant: DMA'd once
            pl.BlockSpec((C, H), lambda b: (0, 0)),  # invariant: DMA'd once
        ],
        out_specs=pl.BlockSpec((pl.Squeezed(), T, H), lambda b: (b, 0, 0)),
        compiler_params=pltpu.CompilerParams(
            dimension_semantics=("parallel",)),
    )(x_bf, wq_t, wk_t, wv_t)


def head_reference(x, wq, wk, wv):
    """Pure-JAX f32 reference mirroring the PyTorch forward (eval mode)."""
    q = x @ wq.T
    k = x @ wk.T
    v = x @ wv.T
    wei = (q @ jnp.swapaxes(k, -2, -1)) * (k.shape[-1] ** -0.5)
    T = x.shape[1]
    tril = jnp.tril(jnp.ones((T, T), dtype=bool))
    wei = jnp.where(tril, wei, -jnp.inf)
    wei = jax.nn.softmax(wei, axis=-1)
    return wei @ v


if __name__ == "__main__":
    # Shapes straight from the module constants:
    # block_size T = 128, n_embd C = 512, head_size H = 64; batch B = 2.
    B, T, C, H = 2, 128, 512, 64

    key = jax.random.PRNGKey(0)
    kx, kq, kk, kv = jax.random.split(key, 4)
    x = jax.random.normal(kx, (B, T, C), dtype=jnp.float32)
    # Deterministic Linear weights, PyTorch shape (head_size, n_embd).
    wq = jax.random.normal(kq, (H, C), dtype=jnp.float32) * 0.02
    wk = jax.random.normal(kk, (H, C), dtype=jnp.float32) * 0.02
    wv = jax.random.normal(kv, (H, C), dtype=jnp.float32) * 0.02

    out = jax.block_until_ready(head_forward(x, wq, wk, wv))
    ref = head_reference(x, wq, wk, wv)

    assert out.shape == (B, T, H), out.shape
    max_err = float(jnp.max(jnp.abs(out - ref)))
    # bf16 MXU feeds with f32 accumulation -> bf16-level tolerance vs f32 ref.
    assert jnp.allclose(out, ref, atol=1e-2, rtol=1e-2), max_err
    print("KERNEL_OK")
</pallas_src>

<mosaic_0001>
module attributes {stable_mosaic.version = 11 : i64} {
  func.func @_head_kernel(%arg0: i32, %arg1: memref<1x128x512xbf16, #tpu.memory_space<vmem>>, %arg2: memref<512x64xbf16, #tpu.memory_space<vmem>>, %arg3: memref<512x64xbf16, #tpu.memory_space<vmem>>, %arg4: memref<512x64xbf16, #tpu.memory_space<vmem>>, %arg5: memref<1x128x64xf32, #tpu.memory_space<vmem>>) attributes {dimension_semantics = [#tpu.dimension_semantics<parallel>], iteration_bounds = array<i64: 2>, scalar_prefetch = 0 : i64, scratch_operands = 0 : i64, tpu.core_type = #tpu.core_type<tc>, window_params = [{transform_indices = @transform_0, window_bounds = array<i64: 1, 128, 512>}, {pipeline_mode = #tpu.pipeline_mode<synchronous>, transform_indices = @transform_1, window_bounds = array<i64: 512, 64>}, {pipeline_mode = #tpu.pipeline_mode<synchronous>, transform_indices = @transform_2, window_bounds = array<i64: 512, 64>}, {pipeline_mode = #tpu.pipeline_mode<synchronous>, transform_indices = @transform_3, window_bounds = array<i64: 512, 64>}, {transform_indices = @transform_4, window_bounds = array<i64: 1, 128, 64>}]} {
    %c0 = arith.constant 0 : index
    %c0_0 = arith.constant 0 : index
    %c0_1 = arith.constant 0 : index
    %0 = vector.load %arg1[%c0, %c0_0, %c0_1] : memref<1x128x512xbf16, #tpu.memory_space<vmem>>, vector<1x128x512xbf16>
    %1 = vector.shape_cast %0 : vector<1x128x512xbf16> to vector<128x512xbf16>
    %c0_2 = arith.constant 0 : index
    %c0_3 = arith.constant 0 : index
    %2 = vector.load %arg2[%c0_2, %c0_3] : memref<512x64xbf16, #tpu.memory_space<vmem>>, vector<512x64xbf16>
    %cst = arith.constant dense<0.000000e+00> : vector<128x64xf32>
    %3 = tpu.matmul %1, %2, %cst {dimension_numbers = #tpu.dot_dimension_numbers<[1], [0], [0], [1], [0, 0, 1, 1], [], []>} : vector<128x512xbf16>, vector<512x64xbf16>, vector<128x64xf32> -> vector<128x64xf32>
    %c0_4 = arith.constant 0 : index
    %c0_5 = arith.constant 0 : index
    %4 = vector.load %arg3[%c0_4, %c0_5] : memref<512x64xbf16, #tpu.memory_space<vmem>>, vector<512x64xbf16>
    %cst_6 = arith.constant dense<0.000000e+00> : vector<128x64xf32>
    %5 = tpu.matmul %1, %4, %cst_6 {dimension_numbers = #tpu.dot_dimension_numbers<[1], [0], [0], [1], [0, 0, 1, 1], [], []>} : vector<128x512xbf16>, vector<512x64xbf16>, vector<128x64xf32> -> vector<128x64xf32>
    %c0_7 = arith.constant 0 : index
    %c0_8 = arith.constant 0 : index
    %6 = vector.load %arg4[%c0_7, %c0_8] : memref<512x64xbf16, #tpu.memory_space<vmem>>, vector<512x64xbf16>
    %cst_9 = arith.constant dense<0.000000e+00> : vector<128x64xf32>
    %7 = tpu.matmul %1, %6, %cst_9 {dimension_numbers = #tpu.dot_dimension_numbers<[1], [0], [0], [1], [0, 0, 1, 1], [], []>} : vector<128x512xbf16>, vector<512x64xbf16>, vector<128x64xf32> -> vector<128x64xf32>
    %8 = arith.truncf %3 : vector<128x64xf32> to vector<128x64xbf16>
    %9 = arith.truncf %5 : vector<128x64xf32> to vector<128x64xbf16>
    %cst_10 = arith.constant dense<0.000000e+00> : vector<128x128xf32>
    %10 = tpu.matmul %8, %9, %cst_10 {dimension_numbers = #tpu.dot_dimension_numbers<[1], [1], [0], [0], [0, 0, 1, 0], [], []>} : vector<128x64xbf16>, vector<128x64xbf16>, vector<128x128xf32> -> vector<128x128xf32>
    %11 = tpu.iota {dimensions = array<i32: 0>} : vector<128x128xi32>
    %12 = tpu.iota {dimensions = array<i32: 1>} : vector<128x128xi32>
    %13 = arith.cmpi sge, %11, %12 : vector<128x128xi32>
    %cst_11 = arith.constant -1.000000e+30 : f32
    %14 = vector.broadcast %cst_11 : f32 to vector<128x128xf32>
    %15 = arith.select %13, %10, %14 : vector<128x128xi1>, vector<128x128xf32>
    %cst_12 = arith.constant dense<0xFF800000> : vector<128xf32>
    %16 = vector.multi_reduction <maximumf>, %15, %cst_12 [1] : vector<128x128xf32> to vector<128xf32>
    %17 = vector.shape_cast %16 : vector<128xf32> to vector<128x1xf32>
    %18 = vector.broadcast %17 : vector<128x1xf32> to vector<128x128xf32>
    %19 = arith.subf %15, %18 : vector<128x128xf32>
    %20 = math.exp %19 : vector<128x128xf32>
    %cst_13 = arith.constant dense<0.000000e+00> : vector<128xf32>
    %21 = vector.multi_reduction <add>, %20, %cst_13 [1] : vector<128x128xf32> to vector<128xf32>
    %22 = vector.shape_cast %21 : vector<128xf32> to vector<128x1xf32>
    %23 = tpu.reciprocal %22 : vector<128x1xf32> -> vector<128x1xf32>
    %24 = vector.broadcast %23 : vector<128x1xf32> to vector<128x128xf32>
    %25 = arith.mulf %20, %24 : vector<128x128xf32>
    %26 = arith.truncf %25 : vector<128x128xf32> to vector<128x128xbf16>
    %27 = arith.truncf %7 : vector<128x64xf32> to vector<128x64xbf16>
    %cst_14 = arith.constant dense<0.000000e+00> : vector<128x64xf32>
    %28 = tpu.matmul %26, %27, %cst_14 {dimension_numbers = #tpu.dot_dimension_numbers<[1], [0], [0], [1], [0, 0, 1, 1], [], []>} : vector<128x128xbf16>, vector<128x64xbf16>, vector<128x64xf32> -> vector<128x64xf32>
    %c0_15 = arith.constant 0 : index
    %c0_16 = arith.constant 0 : index
    %c0_17 = arith.constant 0 : index
    %29 = vector.load %arg5[%c0_15, %c0_16, %c0_17] : memref<1x128x64xf32, #tpu.memory_space<vmem>>, vector<1x128x64xf32>
    %30 = vector.shape_cast %29 : vector<1x128x64xf32> to vector<128x64xf32>
    %31 = vector.shape_cast %28 : vector<128x64xf32> to vector<1x128x64xf32>
    tpu.vector_store %arg5[%c0_15, %c0_16, %c0_17], %31 {strides = array<i32>} : memref<1x128x64xf32, #tpu.memory_space<vmem>>, vector<1x128x64xf32>,
    return
  }
  func.func @transform_0(%arg0: i32) -> (i32, i32, i32) {
    %c0_i32 = arith.constant 0 : i32
    %c0_i32_0 = arith.constant 0 : i32
    %c0_i32_1 = arith.constant 0 : i32
    return %arg0, %c0_i32, %c0_i32_0 : i32, i32, i32
  }
  func.func @transform_1(%arg0: i32) -> (i32, i32) {
    %c0_i32 = arith.constant 0 : i32
    %c0_i32_0 = arith.constant 0 : i32
    %c0_i32_1 = arith.constant 0 : i32
    return %c0_i32, %c0_i32_0 : i32, i32
  }
  func.func @transform_2(%arg0: i32) -> (i32, i32) {
    %c0_i32 = arith.constant 0 : i32
    %c0_i32_0 = arith.constant 0 : i32
    %c0_i32_1 = arith.constant 0 : i32
    return %c0_i32, %c0_i32_0 : i32, i32
  }
  func.func @transform_3(%arg0: i32) -> (i32, i32) {
    %c0_i32 = arith.constant 0 : i32
    %c0_i32_0 = arith.constant 0 : i32
    %c0_i32_1 = arith.constant 0 : i32
    return %c0_i32, %c0_i32_0 : i32, i32
  }
  func.func @transform_4(%arg0: i32) -> (i32, i32, i32) {
    %c0_i32 = arith.constant 0 : i32
    %c0_i32_0 = arith.constant 0 : i32
    %c0_i32_1 = arith.constant 0 : i32
    return %arg0, %c0_i32, %c0_i32_0 : i32, i32, i32
  }
}

</mosaic_0001>

<bundles_post_ra>
// kernel: tpu_custom_call.1
= control target key start
LH: loop header
LB: loop body
LE: loop exit
PB: predicated region body
PF: predicated region fallthrough
CT: control target
= control target key end

     0   :  { %s3168_s15 = smov 0   ;;  %s4058_s0 = inlined_call_operand.vmem [shape: bf16[2,128,512], index: 0, kind: input, shape index: {}]   ;;  %s4059_s1 = inlined_call_operand.vmem [shape: bf16[512,64], index: 1, kind: input, shape index: {}]   ;;  %s4060_s2 = inlined_call_operand.vmem [shape: bf16[512,64], index: 2, kind: input, shape index: {}]   ;;  %s4061_s3 = inlined_call_operand.vmem [shape: bf16[512,64], index: 3, kind: input, shape index: {}]   ;;  %s4062_s4 = inlined_call_operand.vmem [shape: f32[2,128,64], index: 4, kind: output, shape index: {}]  }
   0x1 LB: > { %s2282_s16 = sadd.s32 4294967295, %s3141_s15   ;;  %p2286_p0 = scmp.ge.s32.totalorder %s3141_s15, 1  ;;  %s3141_s15 = sphi %s3168_s15, %s14_s15  }
   0x2   : > { %p162_p1 = scmp.lt.s32.totalorder %s3141_s15, 3 }
   0x4   : > { %p163_p2 = pnand %p2286_p0, %p162_p1 }
   0x6   : > { %166 = sbr.rel (%p163_p2) target bundleno = 1176 (0x498), region = 36 }
   0xb   : > { %v2927_v0 = vld [vmem:[%s4059_s1 + $0x78] sm:$0xff]   ;;  %v2931_v4 = vld [vmem:[%s4059_s1 + $0x70] sm:$0xff]   ;;  %v2935_v8 = vld [vmem:[%s4059_s1 + $0x68] sm:$0xff]   ;;  %p188_p3 = scmp.lt.s32.totalorder %s2282_s16, 1  ;;  %vm1757_vm0 = vcmask 523264  }
   0xc   : > { %v2928_v1 = vld [vmem:[%s4059_s1 + $0xf8] sm:$0xff]   ;;  %2431 = vmatprep.subr.bf16.mxu0 %v2927_v0  ;;  %v2932_v5 = vld [vmem:[%s4059_s1 + $0xf0] sm:$0xff]   ;;  %v2936_v9 = vld [vmem:[%s4059_s1 + $0xe8] sm:$0xff]  }
   0xd   : > { %v2929_v2 = vld [vmem:[%s4059_s1 + $0x38] sm:$0xff]   ;;  %2495 = vmatprep.subr.bf16.mxu1 %v2928_v1  ;;  %v2933_v6 = vld [vmem:[%s4059_s1 + $0x30] sm:$0xff]   ;;  %v2937_v10 = vld [vmem:[%s4059_s1 + $0x28] sm:$0xff]   ;;  %s4098_s16 = smov (!%p188_p3, %s2282_s16), 1 }
   0xe   : > { %v2930_v3 = vld [vmem:[%s4059_s1 + $0xb8] sm:$0xff]   ;;  %2432 = vmatpush3.bf16.msra.mxu0 %v2929_v2  ;;  %v2934_v7 = vld [vmem:[%s4059_s1 + $0xb0] sm:$0xff]   ;;  %v2938_v11 = vld [vmem:[%s4059_s1 + $0xa8] sm:$0xff]   ;;  %s2429_s23 = sshll.u32 %s4098_s16, 8 }
   0xf   : > { %2496 = vmatpush3.bf16.msra.mxu1 %v2930_v3  ;;  %2433 = vmatprep.subr.bf16.mxu0 %v2931_v4  ;;  %v2939_v12 = vld [vmem:[%s4059_s1 + $0x60] sm:$0xff]   ;;  %v2943_v16 = vld [vmem:[%s4059_s1 + $0x58] sm:$0xff]   ;;  %v2947_v20 = vld [vmem:[%s4059_s1 + $0x50] sm:$0xff]   ;;  %s3276_s6 = scalar_lea.vmem %s4058_s0, %s2429_s23  ;;  %s2430_s23 = sshll.u32 %s4098_s16, 7 }
  0x10   : > { %2497 = vmatprep.subr.bf16.mxu1 %v2932_v5  ;;  %v2940_v13 = vld [vmem:[%s4059_s1 + $0xe0] sm:$0xff]   ;;  %v2944_v17 = vld [vmem:[%s4059_s1 + $0xd8] sm:$0xff]   ;;  %v2948_v21 = vld [vmem:[%s4059_s1 + $0xd0] sm:$0xff]   ;;  %s4021_s26 = scalar_lea.vmem %s4062_s4, %s2430_s23 }
  0x11   : > { %v2941_v14 = vld [vmem:[%s4059_s1 + $0x20] sm:$0xff]   ;;  %v2945_v18 = vld [vmem:[%s4059_s1 + $0x18] sm:$0xff]   ;;  %v2949_v22 = vld [vmem:[%s4059_s1 + $0x10] sm:$0xff]  }
  0x12   : > { %2434 = vmatpush3.bf16.msra.mxu0 %v2933_v6  ;;  %v2942_v15 = vld [vmem:[%s4059_s1 + $0xa0] sm:$0xff]   ;;  %v2946_v19 = vld [vmem:[%s4059_s1 + $0x98] sm:$0xff]   ;;  %v2950_v23 = vld [vmem:[%s4059_s1 + $0x90] sm:$0xff]  }
  0x13   : > { %2498 = vmatpush3.bf16.msra.mxu1 %v2934_v7  ;;  %2435 = vmatprep.subr.bf16.mxu0 %v2935_v8  ;;  %v2951_v24 = vld [vmem:[%s4059_s1 + $0x48] sm:$0xff]   ;;  %v2955_v28 = vld [vmem:[%s4059_s1 + $0x40] sm:$0xff]   ;;  %v2965_v36 = vld [vmem:[%s4060_s2 + $0x78] sm:$0xff]  }
  0x14   : > { %2499 = vmatprep.subr.bf16.mxu1 %v2936_v9  ;;  %v2952_v25 = vld [vmem:[%s4059_s1 + $0xc8] sm:$0xff]   ;;  %v2956_v29 = vld [vmem:[%s4059_s1 + $0xc0] sm:$0xff]   ;;  %v2966_v37 = vld [vmem:[%s4060_s2 + $0xf8] sm:$0xff]  }
  0x15   : > { %v2953_v26 = vld [vmem:[%s4059_s1 + $0x8] sm:$0xff]   ;;  %v2957_v30 = vld [vmem:[%s4059_s1] sm:$0xff]   ;;  %v2967_v38 = vld [vmem:[%s4060_s2 + $0x38] sm:$0xff]  }
  0x16   : > { %2436 = vmatpush3.bf16.msra.mxu0 %v2937_v10  ;;  %v2954_v27 = vld [vmem:[%s4059_s1 + $0x88] sm:$0xff]   ;;  %v2958_v31 = vld [vmem:[%s4059_s1 + $0x80] sm:$0xff]   ;;  %v2968_v39 = vld [vmem:[%s4060_s2 + $0xb8] sm:$0xff]  }
  0x17   : > { %2500 = vmatpush3.bf16.msra.mxu1 %v2938_v11  ;;  %2437 = vmatprep.subr.bf16.mxu0 %v2939_v12  ;;  %v3285_v32 = vld [vmem:[%s3276_s6 + $0x4] ss:$16 sps:$4 sm:$0xff]   ;;  %v3288_v33 = vld [vmem:[%s3276_s6 + $0xc] ss:$16 sps:$4 sm:$0xff]   ;;  %v3292_v34 = vld [vmem:[%s3276_s6] ss:$16 sps:$4 sm:$0xff]  }
  0x18   : > { %2501 = vmatprep.subr.bf16.mxu1 %v2940_v13  ;;  %679 = vmatprep.mubr.bf16.mxu0 %v3285_v32  ;;  %v3295_v35 = vld [vmem:[%s3276_s6 + $0x8] ss:$16 sps:$4 sm:$0xff]   ;;  %v3313_v40 = vld [vmem:[%s3276_s6 + $0x24] ss:$16 sps:$4 sm:$0xff]   ;;  %v3316_v41 = vld [vmem:[%s3276_s6 + $0x2c] ss:$16 sps:$4 sm:$0xff]  }
  0x19   : > { %776 = vmatprep.mubr.bf16.mxu1 %v3288_v33  ;;  %v3319_v42 = vld [vmem:[%s3276_s6 + $0x20] ss:$16 sps:$4 sm:$0xff]   ;;  %v3323_v43 = vld [vmem:[%s3276_s6 + $0x28] ss:$16 sps:$4 sm:$0xff]   ;;  %v3341_v48 = vld [vmem:[%s3276_s6 + $0x44] ss:$16 sps:$4 sm:$0xff]  }
  0x1a   : > { %2438 = vmatpush3.bf16.msra.mxu0 %v2941_v14  ;;  %v2975_v44 = vld [vmem:[%s4060_s2 + $0x70] sm:$0xff]   ;;  %v3344_v49 = vld [vmem:[%s3276_s6 + $0x4c] ss:$16 sps:$4 sm:$0xff]   ;;  %v3350_v51 = vld [vmem:[%s3276_s6 + $0x48] ss:$16 sps:$4 sm:$0xff]  }
  0x1b   : > { %2502 = vmatpush3.bf16.msra.mxu1 %v2942_v15  ;;  %2439 = vmatprep.subr.bf16.mxu0 %v2943_v16  ;;  %v2976_v45 = vld [vmem:[%s4060_s2 + $0xf0] sm:$0xff]   ;;  %v2985_v52 = vld [vmem:[%s4060_s2 + $0x68] sm:$0xff]   ;;  %v2995_v60 = vld [vmem:[%s4060_s2 + $0x60] sm:$0xff]  }
  0x1c   : > { %2503 = vmatprep.subr.bf16.mxu1 %v2944_v17  ;;  %v2977_v46 = vld [vmem:[%s4060_s2 + $0x30] sm:$0xff]   ;;  %v2986_v53 = vld [vmem:[%s4060_s2 + $0xe8] sm:$0xff]   ;;  %v2996_v61 = vld [vmem:[%s4060_s2 + $0xe0] sm:$0xff]  }
  0x1d   : > { %v2978_v47 = vld [vmem:[%s4060_s2 + $0xb0] sm:$0xff]   ;;  %v2987_v54 = vld [vmem:[%s4060_s2 + $0x28] sm:$0xff]   ;;  %v2997_v62 = vld [vmem:[%s4060_s2 + $0x20] sm:$0xff]  }
  0x1e   : > { %2440 = vmatpush3.bf16.msra.mxu0 %v2945_v18  ;;  %v3347_v50 = vld [vmem:[%s3276_s6 + $0x40] ss:$16 sps:$4 sm:$0xff]   ;;  %v2988_v55 = vld [vmem:[%s4060_s2 + $0xa8] sm:$0xff]   ;;  %v3369_v56 = vld [vmem:[%s3276_s6 + $0x64] ss:$16 sps:$4 sm:$0xff]  }
  0x1f   : > { %2504 = vmatpush3.bf16.msra.mxu1 %v2946_v19  ;;  %2441 = vmatprep.subr.bf16.mxu0 %v2947_v20  ;;  %v3372_v57 = vld [vmem:[%s3276_s6 + $0x6c] ss:$16 sps:$4 sm:$0xff]   ;;  %v3376_v58 = vld [vmem:[%s3276_s6 + $0x60] ss:$16 sps:$4 sm:$0xff]   ;;  %v3379_v59 = vld [vmem:[%s3276_s6 + $0x68] ss:$16 sps:$4 sm:$0xff]  }
  0x20   : > { %2505 = vmatprep.subr.bf16.mxu1 %v2948_v21  ;;  %v2998_v63 = vld [vmem:[%s4060_s2 + $0xa0] sm:$0xff]   ;;  %v3400_v1 = vld [vmem:[%s3276_s6 + $0x8c] ss:$16 sps:$4 sm:$0xff]   ;;  %v3408_v3 = vld [vmem:[%s3276_s6 + $0x88] ss:$16 sps:$4 sm:$0xff]  }
  0x21   : > { %v3395_v0 = vld [vmem:[%s3276_s6 + $0x84] ss:$16 sps:$4 sm:$0xff]   ;;  %v3405_v2 = vld [vmem:[%s3276_s6 + $0x80] ss:$16 sps:$4 sm:$0xff]   ;;  %v3005_v4 = vld [vmem:[%s4060_s2 + $0x58] sm:$0xff]  }
  0x22   : > { %2442 = vmatpush3.bf16.msra.mxu0 %v2949_v22  ;;  %v3006_v5 = vld [vmem:[%s4060_s2 + $0xd8] sm:$0xff]   ;;  %v3423_v8 = vld [vmem:[%s3276_s6 + $0xa4] ss:$16 sps:$4 sm:$0xff]   ;;  %v3439_v12 = vld [vmem:[%s3276_s6 + $0xa0] ss:$16 sps:$4 sm:$0xff]  }
  0x23   : > { %2506 = vmatpush3.bf16.msra.mxu1 %v2950_v23  ;;  %2443 = vmatprep.subr.bf16.mxu0 %v2951_v24  ;;  %v3007_v6 = vld [vmem:[%s4060_s2 + $0x18] sm:$0xff]   ;;  %v3015_v10 = vld [vmem:[%s4060_s2 + $0x50] sm:$0xff]   ;;  %v3025_v18 = vld [vmem:[%s4060_s2 + $0x48] sm:$0xff]  }
  0x24   : > { %2507 = vmatprep.subr.bf16.mxu1 %v2952_v25  ;;  %v3008_v7 = vld [vmem:[%s4060_s2 + $0x98] sm:$0xff]   ;;  %v3016_v11 = vld [vmem:[%s4060_s2 + $0xd0] sm:$0xff]   ;;  %v3026_v19 = vld [vmem:[%s4060_s2 + $0xc8] sm:$0xff]  }
  0x25   : > { %v3426_v9 = vld [vmem:[%s3276_s6 + $0xac] ss:$16 sps:$4 sm:$0xff]   ;;  %v3442_v13 = vld [vmem:[%s3276_s6 + $0xa8] ss:$16 sps:$4 sm:$0xff]   ;;  %v3017_v14 = vld [vmem:[%s4060_s2 + $0x10] sm:$0xff]  }
  0x26   : > { %2444 = vmatpush3.bf16.msra.mxu0 %v2953_v26  ;;  %v3018_v15 = vld [vmem:[%s4060_s2 + $0x90] sm:$0xff]   ;;  %v3454_v17 = vld [vmem:[%s3276_s6 + $0xcc] ss:$16 sps:$4 sm:$0xff]   ;;  %v3476_v23 = vld [vmem:[%s3276_s6 + $0xc8] ss:$16 sps:$4 sm:$0xff]  }
  0x27   : > { %2508 = vmatpush3.bf16.msra.mxu1 %v2954_v27  ;;  %2445 = vmatprep.subr.bf16.mxu0 %v2955_v28  ;;  %v3451_v16 = vld [vmem:[%s3276_s6 + $0xc4] ss:$16 sps:$4 sm:$0xff]   ;;  %v3027_v20 = vld [vmem:[%s4060_s2 + $0x8] sm:$0xff]   ;;  %v3473_v22 = vld [vmem:[%s3276_s6 + $0xc0] ss:$16 sps:$4 sm:$0xff]  }
  0x28   : > { %2509 = vmatprep.subr.bf16.mxu1 %v2956_v29  ;;  %v3028_v21 = vld [vmem:[%s4060_s2 + $0x88] sm:$0xff]   ;;  %v3479_v24 = vld [vmem:[%s3276_s6 + $0xe4] ss:$16 sps:$4 sm:$0xff]  }
  0x29   : > { %v3482_v25 = vld [vmem:[%s3276_s6 + $0xec] ss:$16 sps:$4 sm:$0xff]   ;;  %v3035_v26 = vld [vmem:[%s4060_s2 + $0x40] sm:$0xff]  }
  0x2a   : > { %2446 = vmatpush3.bf16.msra.mxu0 %v2957_v30  ;;  %v3036_v27 = vld [vmem:[%s4060_s2 + $0xc0] sm:$0xff]   ;;  %v3039_v30 = vld [vmem:[%s4061_s3 + $0x78] sm:$0xff]  }
  0x2b   : > { %2510 = vmatpush3.bf16.msra.mxu1 %v2958_v31  ;;  %2559 = vmatprep.subr.bf16.mxu0 %v2965_v36  ;;  %v3037_v28 = vld [vmem:[%s4060_s2] sm:$0xff]   ;;  %v3507_v36 = vld [vmem:[%s3276_s6 + $0xe8] ss:$16 sps:$4 sm:$0xff]  }
  0x2c   : > { %2623 = vmatprep.subr.bf16.mxu1 %v2966_v37  ;;  %v3038_v29 = vld [vmem:[%s4060_s2 + $0x80] sm:$0xff]   ;;  %v3040_v37 = vld [vmem:[%s4061_s3 + $0x38] sm:$0xff]  }
  0x2d   : > { %680 = vmatmul.mubr.bf16.vlgmr.msra.gmra.mxu0 %v3292_v34  ;;  %v3504_v31 = vld [vmem:[%s3276_s6 + $0xe0] ss:$16 sps:$4 sm:$0xff]  }
  0x2e   : > { %777 = vmatmul.mubr.bf16.vlgmr.msra.gmra.mxu1 %v3295_v35  ;;  %2560 = vmatpush3.bf16.msra.mxu0 %v2967_v38  ;;  %v3041_v38 = vld [vmem:[%s4061_s3 + $0x70] sm:$0xff]  }
  0x2f   : > { %2624 = vmatpush3.bf16.msra.mxu1 %v2968_v39  ;;  %687 = vmatprep.mubr.bf16.mxu0 %v3313_v40  ;;  %v3042_v39 = vld [vmem:[%s4061_s3 + $0x30] sm:$0xff]  }
  0x30   : > { %784 = vmatprep.mubr.bf16.mxu1 %v3316_v41  ;;  %2561 = vmatprep.subr.bf16.mxu0 %v2975_v44  ;;  %v3043_v44 = vld [vmem:[%s4061_s3 + $0x68] sm:$0xff]  }
  0x31   : > { %2625 = vmatprep.subr.bf16.mxu1 %v2976_v45  ;;  %v3044_v45 = vld [vmem:[%s4061_s3 + $0x28] sm:$0xff]  }
  0x32   : > { %2562 = vmatpush3.bf16.msra.mxu0 %v2977_v46  ;;  %v3045_v46 = vld [vmem:[%s4061_s3 + $0x60] sm:$0xff]  }
  0x33   : > { %2626 = vmatpush3.bf16.msra.mxu1 %v2978_v47  ;;  %2563 = vmatprep.subr.bf16.mxu0 %v2985_v52  ;;  %v3046_v47 = vld [vmem:[%s4061_s3 + $0x20] sm:$0xff]   ;;  %v3055_v52 = vld [vmem:[%s4061_s3 + $0xf8] sm:$0xff]  }
  0x34   : > { %2627 = vmatprep.subr.bf16.mxu1 %v2986_v53  ;;  %v3047_v53 = vld [vmem:[%s4061_s3 + $0x58] sm:$0xff]  }
  0x35   : > { %688 = vmatmul.mubr.bf16.gmra.mxu0 %v3319_v42 }
  0x36   : > { %785 = vmatmul.mubr.bf16.gmra.mxu1 %v3323_v43  ;;  %695 = vmatprep.mubr.bf16.mxu0 %v3341_v48 }
  0x37   : > { %792 = vmatprep.mubr.bf16.mxu1 %v3344_v49  ;;  %2564 = vmatpush3.bf16.msra.mxu0 %v2987_v54  ;;  %v3056_v54 = vld [vmem:[%s4061_s3 + $0xb8] sm:$0xff]  }
  0x38   : > { %2628 = vmatpush3.bf16.msra.mxu1 %v2988_v55  ;;  %2565 = vmatprep.subr.bf16.mxu0 %v2995_v60  ;;  %v3057_v55 = vld [vmem:[%s4061_s3 + $0xf0] sm:$0xff]  }
  0x39   : > { %2629 = vmatprep.subr.bf16.mxu1 %v2996_v61  ;;  %v3058_v60 = vld [vmem:[%s4061_s3 + $0xb0] sm:$0xff]   ;;  %v3048_v61 = vld [vmem:[%s4061_s3 + $0x18] sm:$0xff]  }
  0x3b   : > { %2566 = vmatpush3.bf16.msra.mxu0 %v2997_v62  ;;  %v3049_v62 = vld [vmem:[%s4061_s3 + $0x50] sm:$0xff]  }
  0x3c   : > { %2630 = vmatpush3.bf16.msra.mxu1 %v2998_v63  ;;  %2567 = vmatprep.subr.bf16.mxu0 %v3005_v4  ;;  %v3059_v63 = vld [vmem:[%s4061_s3 + $0xe8] sm:$0xff]  }
  0x3d   : > { %696 = vmatmul.mubr.bf16.gmra.mxu0 %v3347_v50  ;;  %2631 = vmatprep.subr.bf16.mxu1 %v3006_v5  ;;  %v3060_v4 = vld [vmem:[%s4061_s3 + $0xa8] sm:$0xff]   ;;  %v3050_v5 = vld [vmem:[%s4061_s3 + $0x10] sm:$0xff]  }
  0x3e   : > { %793 = vmatmul.mubr.bf16.gmra.mxu1 %v3350_v51  ;;  %703 = vmatprep.mubr.bf16.mxu0 %v3369_v56 }
  0x3f   : > { %800 = vmatprep.mubr.bf16.mxu1 %v3372_v57  ;;  %2568 = vmatpush3.bf16.msra.mxu0 %v3007_v6  ;;  %v3051_v6 = vld [vmem:[%s4061_s3 + $0x48] sm:$0xff]  }
  0x40   : > { %2632 = vmatpush3.bf16.msra.mxu1 %v3008_v7  ;;  %2569 = vmatprep.subr.bf16.mxu0 %v3015_v10  ;;  %v3061_v7 = vld [vmem:[%s4061_s3 + $0xe0] sm:$0xff]  }
  0x41   : > { %2633 = vmatprep.subr.bf16.mxu1 %v3016_v11  ;;  %v3062_v10 = vld [vmem:[%s4061_s3 + $0xa0] sm:$0xff]   ;;  %v3052_v11 = vld [vmem:[%s4061_s3 + $0x8] sm:$0xff]  }
  0x43   : > { %2570 = vmatpush3.bf16.msra.mxu0 %v3017_v14  ;;  %v3053_v14 = vld [vmem:[%s4061_s3 + $0x40] sm:$0xff]  }
  0x44   : > { %2634 = vmatpush3.bf16.msra.mxu1 %v3018_v15  ;;  %2571 = vmatprep.subr.bf16.mxu0 %v3025_v18  ;;  %v3063_v15 = vld [vmem:[%s4061_s3 + $0xd8] sm:$0xff]  }
  0x45   : > { %704 = vmatmul.mubr.bf16.gmra.mxu0 %v3376_v58  ;;  %2635 = vmatprep.subr.bf16.mxu1 %v3026_v19  ;;  %v3064_v18 = vld [vmem:[%s4061_s3 + $0x98] sm:$0xff]   ;;  %v3054_v19 = vld [vmem:[%s4061_s3] sm:$0xff]  }
  0x46   : > { %801 = vmatmul.mubr.bf16.gmra.mxu1 %v3379_v59  ;;  %711 = vmatprep.mubr.bf16.mxu0 %v3395_v0 }
  0x47   : > { %808 = vmatprep.mubr.bf16.mxu1 %v3400_v1  ;;  %2572 = vmatpush3.bf16.msra.mxu0 %v3027_v20  ;;  %v3065_v20 = vld [vmem:[%s4061_s3 + $0xd0] sm:$0xff]  }
  0x48   : > { %2636 = vmatpush3.bf16.msra.mxu1 %v3028_v21  ;;  %2573 = vmatprep.subr.bf16.mxu0 %v3035_v26  ;;  %v3066_v21 = vld [vmem:[%s4061_s3 + $0x90] sm:$0xff]   ;;  %v3067_v26 = vld [vmem:[%s4061_s3 + $0xc8] sm:$0xff]  }
  0x49   : > { %2637 = vmatprep.subr.bf16.mxu1 %v3036_v27  ;;  %v3068_v27 = vld [vmem:[%s4061_s3 + $0x88] sm:$0xff]  }
  0x4b   : > { %2574 = vmatpush3.bf16.msra.mxu0 %v3037_v28  ;;  %v3069_v28 = vld [vmem:[%s4061_s3 + $0xc0] sm:$0xff]  }
  0x4c   : > { %2638 = vmatpush3.bf16.msra.mxu1 %v3038_v29  ;;  %2687 = vmatprep.subr.bf16.mxu0 %v3039_v30  ;;  %v3070_v29 = vld [vmem:[%s4061_s3 + $0x80] sm:$0xff]  }
  0x4d   : > { %712 = vmatmul.mubr.bf16.gmra.mxu0 %v3405_v2  ;;  %2751 = vmatprep.subr.bf16.mxu1 %v3055_v52 }
  0x4e   : > { %809 = vmatmul.mubr.bf16.gmra.mxu1 %v3408_v3  ;;  %719 = vmatprep.mubr.bf16.mxu0 %v3423_v8 }
  0x4f   : > { %816 = vmatprep.mubr.bf16.mxu1 %v3426_v9 }
  0x55   : > { %720 = vmatmul.mubr.bf16.gmra.mxu0 %v3439_v12 }
  0x56   : > { %817 = vmatmul.mubr.bf16.gmra.mxu1 %v3442_v13  ;;  %727 = vmatprep.mubr.bf16.mxu0 %v3451_v16 }
  0x57   : > { %824 = vmatprep.mubr.bf16.mxu1 %v3454_v17 }
  0x5d   : > { %728 = vmatmul.mubr.bf16.gmra.mxu0 %v3473_v22 }
  0x5e   : > { %825 = vmatmul.mubr.bf16.gmra.mxu1 %v3476_v23  ;;  %735 = vmatprep.mubr.bf16.mxu0 %v3479_v24 }
  0x5f   : > { %832 = vmatprep.mubr.bf16.mxu1 %v3482_v25 }
  0x65   : > { %736 = vmatmul.mubr.bf16.gmra.mxu0 %v3504_v31 }
  0x66   : > { %833 = vmatmul.mubr.bf16.gmra.mxu1 %v3507_v36  ;;  %1129 = vmatprep.mubr.bf16.mxu0 %v3285_v32 }
  0x67   : > { %1226 = vmatprep.mubr.bf16.mxu1 %v3288_v33 }
  0x6d   : > { %1130 = vmatmul.mubr.bf16.vlgmr.msra.gmra.mxu0 %v3292_v34 }
  0x6e   : > { %1227 = vmatmul.mubr.bf16.vlgmr.msra.gmra.mxu1 %v3295_v35  ;;  %1137 = vmatprep.mubr.bf16.mxu0 %v3313_v40 }
  0x6f   : > { %1234 = vmatprep.mubr.bf16.mxu1 %v3316_v41  ;;  %2688 = vmatpush3.bf16.msra.mxu0 %v3040_v37 }
  0x70   : > { %2689 = vmatprep.subr.bf16.mxu0 %v3041_v38  ;;  %2752 = vmatpush3.bf16.msra.mxu1 %v3056_v54 }
  0x71   : > { %2753 = vmatprep.subr.bf16.mxu1 %v3057_v55 }
  0x73   : > { %2690 = vmatpush3.bf16.msra.mxu0 %v3042_v39 }
  0x74   : > { %2691 = vmatprep.subr.bf16.mxu0 %v3043_v44  ;;  %2754 = vmatpush3.bf16.msra.mxu1 %v3058_v60 }
  0x75   : > { %1138 = vmatmul.mubr.bf16.gmra.mxu0 %v3319_v42  ;;  %2755 = vmatprep.subr.bf16.mxu1 %v3059_v63 }
  0x76   : > { %1235 = vmatmul.mubr.bf16.gmra.mxu1 %v3323_v43  ;;  %1145 = vmatprep.mubr.bf16.mxu0 %v3341_v48 }
  0x77   : > { %1242 = vmatprep.mubr.bf16.mxu1 %v3344_v49  ;;  %2692 = vmatpush3.bf16.msra.mxu0 %v3044_v45 }
  0x78   : > { %2693 = vmatprep.subr.bf16.mxu0 %v3045_v46  ;;  %2756 = vmatpush3.bf16.msra.mxu1 %v3060_v4 }
  0x79   : > { %2757 = vmatprep.subr.bf16.mxu1 %v3061_v7 }
  0x7b   : > { %2694 = vmatpush3.bf16.msra.mxu0 %v3046_v47 }
  0x7c   : > { %2695 = vmatprep.subr.bf16.mxu0 %v3047_v53  ;;  %2758 = vmatpush3.bf16.msra.mxu1 %v3062_v10 }
  0x7d   : > { %1146 = vmatmul.mubr.bf16.gmra.mxu0 %v3347_v50  ;;  %2759 = vmatprep.subr.bf16.mxu1 %v3063_v15 }
  0x7e   : > { %1243 = vmatmul.mubr.bf16.gmra.mxu1 %v3350_v51  ;;  %1153 = vmatprep.mubr.bf16.mxu0 %v3369_v56 }
  0x7f   : > { %1250 = vmatprep.mubr.bf16.mxu1 %v3372_v57  ;;  %2696 = vmatpush3.bf16.msra.mxu0 %v3048_v61 }
  0x80   : > { %2697 = vmatprep.subr.bf16.mxu0 %v3049_v62  ;;  %2760 = vmatpush3.bf16.msra.mxu1 %v3064_v18 }
  0x81   : > { %2761 = vmatprep.subr.bf16.mxu1 %v3065_v20 }
  0x83   : > { %2698 = vmatpush3.bf16.msra.mxu0 %v3050_v5 }
  0x84   : > { %2699 = vmatprep.subr.bf16.mxu0 %v3051_v6  ;;  %2762 = vmatpush3.bf16.msra.mxu1 %v3066_v21 }
  0x85   : > { %1154 = vmatmul.mubr.bf16.gmra.mxu0 %v3376_v58  ;;  %2763 = vmatprep.subr.bf16.mxu1 %v3067_v26 }
  0x86   : > { %1251 = vmatmul.mubr.bf16.gmra.mxu1 %v3379_v59  ;;  %1161 = vmatprep.mubr.bf16.mxu0 %v3395_v0 }
  0x87   : > { %1258 = vmatprep.mubr.bf16.mxu1 %v3400_v1  ;;  %2700 = vmatpush3.bf16.msra.mxu0 %v3052_v11 }
  0x88   : > { %2701 = vmatprep.subr.bf16.mxu0 %v3053_v14  ;;  %2764 = vmatpush3.bf16.msra.mxu1 %v3068_v27 }
  0x89   : > { %2765 = vmatprep.subr.bf16.mxu1 %v3069_v28 }
  0x8b   : > { %2702 = vmatpush3.bf16.msra.mxu0 %v3054_v19 }
  0x8c   : > { %2766 = vmatpush3.bf16.msra.mxu1 %v3070_v29 }
  0x8d   : > { %1162 = vmatmul.mubr.bf16.gmra.mxu0 %v3405_v2 }
  0x8e   : > { %1259 = vmatmul.mubr.bf16.gmra.mxu1 %v3408_v3  ;;  %1169 = vmatprep.mubr.bf16.mxu0 %v3423_v8 }
  0x8f   : > { %1266 = vmatprep.mubr.bf16.mxu1 %v3426_v9 }
  0x95   : > { %1170 = vmatmul.mubr.bf16.gmra.mxu0 %v3439_v12 }
  0x96   : > { %1267 = vmatmul.mubr.bf16.gmra.mxu1 %v3442_v13  ;;  %1177 = vmatprep.mubr.bf16.mxu0 %v3451_v16 }
  0x97   : > { %1274 = vmatprep.mubr.bf16.mxu1 %v3454_v17 }
  0x9d   : > { %1178 = vmatmul.mubr.bf16.gmra.mxu0 %v3473_v22 }
  0x9e   : > { %1275 = vmatmul.mubr.bf16.gmra.mxu1 %v3476_v23  ;;  %1185 = vmatprep.mubr.bf16.mxu0 %v3479_v24 }
  0x9f   : > { %1282 = vmatprep.mubr.bf16.mxu1 %v3482_v25 }
  0xa5   : > { %1186 = vmatmul.mubr.bf16.gmra.mxu0 %v3504_v31 }
  0xa6   : > { %1283 = vmatmul.mubr.bf16.gmra.mxu1 %v3507_v36  ;;  %1579 = vmatprep.mubr.bf16.mxu0 %v3285_v32 }
  0xa7   : > { %1676 = vmatprep.mubr.bf16.mxu1 %v3288_v33 }
  0xad   : > { %1580 = vmatmul.mubr.bf16.vlgmr.msra.gmra.mxu0 %v3292_v34 }
  0xae   : > { %1677 = vmatmul.mubr.bf16.vlgmr.msra.gmra.mxu1 %v3295_v35  ;;  %1587 = vmatprep.mubr.bf16.mxu0 %v3313_v40 }
  0xaf   : > { %1684 = vmatprep.mubr.bf16.mxu1 %v3316_v41 }
  0xb5   : > { %1588 = vmatmul.mubr.bf16.gmra.mxu0 %v3319_v42 }
  0xb6   : > { %1685 = vmatmul.mubr.bf16.gmra.mxu1 %v3323_v43  ;;  %1595 = vmatprep.mubr.bf16.mxu0 %v3341_v48 }
  0xb7   : > { %1692 = vmatprep.mubr.bf16.mxu1 %v3344_v49 }
  0xbd   : > { %1596 = vmatmul.mubr.bf16.gmra.mxu0 %v3347_v50 }
  0xbe   : > { %1693 = vmatmul.mubr.bf16.gmra.mxu1 %v3350_v51  ;;  %1603 = vmatprep.mubr.bf16.mxu0 %v3369_v56 }
  0xbf   : > { %1700 = vmatprep.mubr.bf16.mxu1 %v3372_v57 }
  0xc5   : > { %1604 = vmatmul.mubr.bf16.gmra.mxu0 %v3376_v58 }
  0xc6   : > { %1701 = vmatmul.mubr.bf16.gmra.mxu1 %v3379_v59  ;;  %1611 = vmatprep.mubr.bf16.mxu0 %v3395_v0 }
  0xc7   : > { %1708 = vmatprep.mubr.bf16.mxu1 %v3400_v1 }
  0xcd   : > { %1612 = vmatmul.mubr.bf16.gmra.mxu0 %v3405_v2 }
  0xce   : > { %1709 = vmatmul.mubr.bf16.gmra.mxu1 %v3408_v3  ;;  %1619 = vmatprep.mubr.bf16.mxu0 %v3423_v8 }
  0xcf   : > { %1716 = vmatprep.mubr.bf16.mxu1 %v3426_v9 }
  0xd5   : > { %1620 = vmatmul.mubr.bf16.gmra.mxu0 %v3439_v12 }
  0xd6   : > { %1717 = vmatmul.mubr.bf16.gmra.mxu1 %v3442_v13  ;;  %1627 = vmatprep.mubr.bf16.mxu0 %v3451_v16 }
  0xd7   : > { %1724 = vmatprep.mubr.bf16.mxu1 %v3454_v17 }
  0xdd   : > { %1628 = vmatmul.mubr.bf16.gmra.mxu0 %v3473_v22 }
  0xde   : > { %1725 = vmatmul.mubr.bf16.gmra.mxu1 %v3476_v23  ;;  %1635 = vmatprep.mubr.bf16.mxu0 %v3479_v24 }
  0xdf   : > { %1732 = vmatprep.mubr.bf16.mxu1 %v3482_v25 }
  0xe5   : > { %1636 = vmatmul.mubr.bf16.gmra.mxu0 %v3504_v31 }
  0xe6   : > { %1733 = vmatmul.mubr.bf16.gmra.mxu1 %v3507_v36 }
  0xed   : > { %v2447_v32 = vpop.f32.mrf.mxu0 }
  0xee   : > { %v2511_v33 = vpop.f32.mrf.mxu1 }
  0xef   : > { %v2448_v34 = vpop.f32.mrf.mxu0 }
  0xf0   : > { %v2512_v35 = vpop.f32.mrf.mxu1  ;;  %v2449_v42 = vadd.f32 %v2448_v34, %v2447_v32 }
  0xf1   : > { %v2450_v40 = vpop.f32.mrf.mxu0  ;;  %v2513_v43 = vadd.f32 %v2512_v35, %v2511_v33 }
  0xf2   : > { %v2514_v41 = vpop.f32.mrf.mxu1 }
  0xf3   : > { %v2451_v48 = vpop.f32.mrf.mxu0  ;;  %v779_v58 = vadd.f32 %v2513_v43, %v2449_v42 }
  0xf4   : > { %v2515_v49 = vpop.f32.mrf.mxu1  ;;  %v2452_v50 = vadd.f32 %v2451_v48, %v2450_v40 }
  0xf5   : > { %v2516_v51 = vadd.f32 %v2515_v49, %v2514_v41  ;;  %v2453_v56 = vpop.f32.mrf.mxu0 }
  0xf6   : > { %v2517_v57 = vpop.f32.mrf.mxu1 }
  0xf7   : > { %v782_v59 = vadd.f32 %v2516_v51, %v2452_v50  ;;  %v2454_v0 = vpop.f32.mrf.mxu0 }
  0xf8   : > { %v2518_v1 = vpop.f32.mrf.mxu1  ;;  %v2455_v3 = vadd.f32 %v2454_v0, %v2453_v56 }
  0xf9   : > { %v1741_v2 = vpack.c.bf16 %v782_v59, %v779_v58  ;;  %v2519_v8 = vadd.f32 %v2518_v1, %v2517_v57  ;;  %v2456_v9 = vpop.f32.mrf.mxu0 }
  0xfa   : > { %v2520_v12 = vpop.f32.mrf.mxu1 }
  0xfb   : > { %v3668_v13 = vadd.f32 %v2519_v8, %v2455_v3  ;;  %2863 = vmatprep.mubr.msk.bf16.mxu0 %vm1757_vm0, %v1741_v2  ;;  %v2457_v16 = vpop.f32.mrf.mxu0 }
  0xfc   : > { %v2521_v17 = vpop.f32.mrf.mxu1  ;;  %v2458_v22 = vadd.f32 %v2457_v16, %v2456_v9 }
  0xfd   : > { %v2522_v23 = vadd.f32 %v2521_v17, %v2520_v12  ;;  %v2459_v24 = vpop.f32.mrf.mxu0 }
  0xfe   : > { %v2523_v25 = vpop.f32.mrf.mxu1 }
  0xff   : > { %v3671_v30 = vadd.f32 %v2522_v23, %v2458_v22  ;;  %v2460_v31 = vpop.f32.mrf.mxu0 }
 0x100   : > { %v2524_v36 = vpop.f32.mrf.mxu1  ;;  %v2461_v38 = vadd.f32 %v2460_v31, %v2459_v24 }
 0x101   : > { %v2525_v39 = vadd.f32 %v2524_v36, %v2523_v25  ;;  %v2462_v44 = vpop.f32.mrf.mxu0 }
 0x102   : > { %v2526_v45 = vpop.f32.mrf.mxu1 }
 0x103   : > { %v3675_v46 = vadd.f32 %v2525_v39, %v2461_v38  ;;  %v2463_v47 = vpop.f32.mrf.mxu0 }
 0x104   : > { %v2527_v52 = vpop.f32.mrf.mxu1  ;;  %v2464_v53 = vadd.f32 %v2463_v47, %v2462_v44 }
 0x105   : > { %v2528_v54 = vadd.f32 %v2527_v52, %v2526_v45  ;;  %v2465_v55 = vpop.f32.mrf.mxu0 }
 0x106   : > { %v2529_v60 = vpop.f32.mrf.mxu1 }
 0x107   : > { %v3677_v61 = vadd.f32 %v2528_v54, %v2464_v53  ;;  %v2466_v62 = vpop.f32.mrf.mxu0 }
 0x108   : > { %v2530_v63 = vpop.f32.mrf.mxu1  ;;  %v2467_v5 = vadd.f32 %v2466_v62, %v2465_v55 }
 0x109   : > { %v2531_v6 = vadd.f32 %v2530_v63, %v2529_v60  ;;  %v2468_v7 = vpop.f32.mrf.mxu0 }
 0x10a   : > { %v2532_v10 = vpop.f32.mrf.mxu1 }
 0x10b   : > { %v3681_v11 = vadd.f32 %v2531_v6, %v2467_v5  ;;  %v2469_v14 = vpop.f32.mrf.mxu0 }
 0x10c   : > { %v2533_v15 = vpop.f32.mrf.mxu1  ;;  %v2470_v18 = vadd.f32 %v2469_v14, %v2468_v7 }
 0x10d   : > { %v2534_v19 = vadd.f32 %v2533_v15, %v2532_v10  ;;  %v2471_v20 = vpop.f32.mrf.mxu0 }
 0x10e   : > { %v2535_v21 = vpop.f32.mrf.mxu1 }
 0x10f   : > { %v3683_v26 = vadd.f32 %v2534_v19, %v2470_v18  ;;  %v2472_v27 = vpop.f32.mrf.mxu0 }
 0x110   : > { %v2536_v28 = vpop.f32.mrf.mxu1  ;;  %v2473_v32 = vadd.f32 %v2472_v27, %v2471_v20 }
 0x111   : > { %v2537_v33 = vadd.f32 %v2536_v28, %v2535_v21  ;;  %v2474_v34 = vpop.f32.mrf.mxu0 }
 0x112   : > { %v2538_v35 = vpop.f32.mrf.mxu1 }
 0x113   : > { %v3687_v40 = vadd.f32 %v2537_v33, %v2473_v32  ;;  %v2475_v41 = vpop.f32.mrf.mxu0 }
 0x114   : > { %v2539_v42 = vpop.f32.mrf.mxu1  ;;  %v2476_v43 = vadd.f32 %v2475_v41, %v2474_v34 }
 0x115   : > { %4072 = vst [vmem:[#allocation2_spill] sm:$0xff] %v3687_v40  ;;  %v2540_v48 = vadd.f32 %v2539_v42, %v2538_v35  ;;  %v2477_v49 = vpop.f32.mrf.mxu0 }
 0x116   : > { %v2541_v50 = vpop.f32.mrf.mxu1 }
 0x117   : > { %v3689_v51 = vadd.f32 %v2540_v48, %v2476_v43  ;;  %v2478_v56 = vpop.f32.mrf.mxu0 }
 0x118   : > { %v2542_v57 = vpop.f32.mrf.mxu1  ;;  %v2479_v59 = vadd.f32 %v2478_v56, %v2477_v49 }
 0x119   : > { %4073 = vst [vmem:[#allocation3_spill] sm:$0xff] %v3689_v51  ;;  %v2543_v0 = vadd.f32 %v2542_v57, %v2541_v50  ;;  %v2480_v1 = vpop.f32.mrf.mxu0 }
 0x11a   : > { %v2544_v2 = vpop.f32.mrf.mxu1 }
 0x11b   : > { %v3693_v3 = vadd.f32 %v2543_v0, %v2479_v59  ;;  %v2481_v8 = vpop.f32.mrf.mxu0 }
 0x11c   : > { %v2545_v9 = vpop.f32.mrf.mxu1  ;;  %v2482_v12 = vadd.f32 %v2481_v8, %v2480_v1 }
 0x11d   : > { %4074 = vst [vmem:[#allocation4_spill] sm:$0xff] %v3693_v3  ;;  %v2546_v16 = vadd.f32 %v2545_v9, %v2544_v2  ;;  %v2483_v17 = vpop.f32.mrf.mxu0 }
 0x11e   : > { %v2547_v22 = vpop.f32.mrf.mxu1 }
 0x11f   : > { %v3695_v23 = vadd.f32 %v2546_v16, %v2482_v12  ;;  %v2484_v24 = vpop.f32.mrf.mxu0 }
 0x120   : > { %v2548_v25 = vpop.f32.mrf.mxu1  ;;  %v2485_v36 = vadd.f32 %v2484_v24, %v2483_v17 }
 0x121   : > { %4075 = vst [vmem:[#allocation5_spill] sm:$0xff] %v3695_v23  ;;  %v2549_v38 = vadd.f32 %v2548_v25, %v2547_v22  ;;  %v2486_v39 = vpop.f32.mrf.mxu0 }
 0x122   : > { %v2550_v44 = vpop.f32.mrf.mxu1 }
 0x123   : > { %v3699_v45 = vadd.f32 %v2549_v38, %v2485_v36  ;;  %v2487_v47 = vpop.f32.mrf.mxu0 }
 0x124   : > { %v2551_v52 = vpop.f32.mrf.mxu1  ;;  %v2488_v53 = vadd.f32 %v2487_v47, %v2486_v39 }
 0x125   : > { %4076 = vst [vmem:[#allocation6_spill] sm:$0xff] %v3699_v45  ;;  %v2552_v54 = vadd.f32 %v2551_v52, %v2550_v44  ;;  %v2489_v55 = vpop.f32.mrf.mxu0 }
 0x126   : > { %v2553_v60 = vpop.f32.mrf.mxu1 }
 0x127   : > { %v3701_v62 = vadd.f32 %v2552_v54, %v2488_v53  ;;  %v2490_v63 = vpop.f32.mrf.mxu0 }
 0x128   : > { %v2554_v5 = vpop.f32.mrf.mxu1  ;;  %v2491_v7 = vadd.f32 %v2490_v63, %v2489_v55 }
 0x129   : > { %4077 = vst [vmem:[#allocation7_spill] sm:$0xff] %v3701_v62  ;;  %v2555_v10 = vadd.f32 %v2554_v5, %v2553_v60  ;;  %v2492_v14 = vpop.f32.mrf.mxu0 }
 0x12a   : > { %v2556_v15 = vpop.f32.mrf.mxu1 }
 0x12b   : > { %v3705_v18 = vadd.f32 %v2555_v10, %v2491_v7  ;;  %v2493_v19 = vpop.f32.mrf.mxu0 }
 0x12c   : > { %v2557_v20 = vpop.f32.mrf.mxu1  ;;  %v2494_v21 = vadd.f32 %v2493_v19, %v2492_v14 }
 0x12d   : > { %4078 = vst [vmem:[#allocation8_spill] sm:$0xff] %v3705_v18  ;;  %v2558_v27 = vadd.f32 %v2557_v20, %v2556_v15  ;;  %v2575_v28 = vpop.f32.mrf.mxu0 }
 0x12e   : > { %v2639_v32 = vpop.f32.mrf.mxu1 }
 0x12f   : > { %v3707_v33 = vadd.f32 %v2558_v27, %v2494_v21  ;;  %v2576_v34 = vpop.f32.mrf.mxu0 }
 0x130   : > { %v2640_v35 = vpop.f32.mrf.mxu1  ;;  %v2577_v42 = vadd.f32 %v2576_v34, %v2575_v28 }
 0x131   : > { %4079 = vst [vmem:[#allocation9_spill] sm:$0xff] %v3707_v33  ;;  %v2641_v43 = vadd.f32 %v2640_v35, %v2639_v32  ;;  %v2578_v48 = vpop.f32.mrf.mxu0 }
 0x132   : > { %v2642_v49 = vpop.f32.mrf.mxu1 }
 0x133   : > { %v1229_v50 = vadd.f32 %v2641_v43, %v2577_v42  ;;  %v2579_v56 = vpop.f32.mrf.mxu0 }
 0x134   : > { %v2643_v57 = vpop.f32.mrf.mxu1  ;;  %v2580_v59 = vadd.f32 %v2579_v56, %v2578_v48 }
 0x135   : > { %v2644_v0 = vadd.f32 %v2643_v57, %v2642_v49  ;;  %v2581_v1 = vpop.f32.mrf.mxu0 }
 0x136   : > { %v2645_v2 = vpop.f32.mrf.mxu1 }
 0x137   : > { %v1232_v8 = vadd.f32 %v2644_v0, %v2580_v59  ;;  %v2582_v9 = vpop.f32.mrf.mxu0 }
 0x138   : > { %v2646_v12 = vpop.f32.mrf.mxu1  ;;  %v2583_v17 = vadd.f32 %v2582_v9, %v2581_v1 }
 0x139   : > { %v3711_v16 = vpack.c.bf16 %v1232_v8, %v1229_v50  ;;  %v2647_v22 = vadd.f32 %v2646_v12, %v2645_v2  ;;  %v2584_v24 = vpop.f32.mrf.mxu0 }
 0x13a   : > { %v2648_v25 = vpop.f32.mrf.mxu1 }
 0x13b   : > { %v1237_v36 = vadd.f32 %v2647_v22, %v2583_v17  ;;  %v2585_v38 = vpop.f32.mrf.mxu0 }
 0x13c   : > { %v2649_v39 = vpop.f32.mrf.mxu1  ;;  %v2586_v44 = vadd.f32 %v2585_v38, %v2584_v24 }
 0x13d   : > { %v2650_v47 = vadd.f32 %v2649_v39, %v2648_v25  ;;  %v2587_v52 = vpop.f32.mrf.mxu0 }
 0x13e   : > { %v2651_v53 = vpop.f32.mrf.mxu1 }
 0x13f   : > { %v1240_v54 = vadd.f32 %v2650_v47, %v2586_v44  ;;  %v2588_v55 = vpop.f32.mrf.mxu0 }
 0x140   : > { %v2652_v60 = vpop.f32.mrf.mxu1  ;;  %v2589_v5 = vadd.f32 %v2588_v55, %v2587_v52 }
 0x141   : > { %v3713_v63 = vpack.c.bf16 %v1240_v54, %v1237_v36  ;;  %v2653_v7 = vadd.f32 %v2652_v60, %v2651_v53  ;;  %v2590_v10 = vpop.f32.mrf.mxu0 }
 0x142   : > { %v2654_v14 = vpop.f32.mrf.mxu1 }
 0x143   : > { %v1245_v15 = vadd.f32 %v2653_v7, %v2589_v5  ;;  %v2591_v19 = vpop.f32.mrf.mxu0 }
 0x144   : > { %v2655_v20 = vpop.f32.mrf.mxu1  ;;  %v2592_v21 = vadd.f32 %v2591_v19, %v2590_v10 }
 0x145   : > { %v2656_v27 = vadd.f32 %v2655_v20, %v2654_v14  ;;  %v2593_v28 = vpop.f32.mrf.mxu0 }
 0x146   : > { %v2657_v32 = vpop.f32.mrf.mxu1 }
 0x147   : > { %v1248_v34 = vadd.f32 %v2656_v27, %v2592_v21  ;;  %v2594_v35 = vpop.f32.mrf.mxu0 }
 0x148   : > { %v2658_v42 = vpop.f32.mrf.mxu1  ;;  %v2595_v48 = vadd.f32 %v2594_v35, %v2593_v28 }
 0x149   : > { %v3715_v43 = vpack.c.bf16 %v1248_v34, %v1245_v15  ;;  %v2659_v49 = vadd.f32 %v2658_v42, %v2657_v32  ;;  %v3717_v50 = vpop.f32.mrf.mxu0 }
 0x14a   : > { %v3719_v56 = vpop.f32.mrf.mxu1 }
 0x14b   : > { %v3721_v57 = vadd.f32 %v2659_v49, %v2595_v48  ;;  %v3723_v59 = vpop.f32.mrf.mxu0 }
 0x14c   : > { %v3725_v0 = vpop.f32.mrf.mxu1 }
 0x14d   : > { %v3727_v1 = vpop.f32.mrf.mxu0 }
 0x14e   : > { %v3729_v2 = vpop.f32.mrf.mxu1 }
 0x14f   : > { %v3731_v8 = vpop.f32.mrf.mxu0 }
 0x150   : > { %v3733_v9 = vpop.f32.mrf.mxu1 }
 0x151   : > { %v3735_v12 = vpop.f32.mrf.mxu0 }
 0x152   : > { %v3737_v17 = vpop.f32.mrf.mxu1 }
 0x153   : > { %v3739_v22 = vpop.f32.mrf.mxu0 }
 0x154   : > { %v3741_v24 = vpop.f32.mrf.mxu1 }
 0x155   : > { %v2605_v25 = vpop.f32.mrf.mxu0 }
 0x156   : > { %v2669_v36 = vpop.f32.mrf.mxu1 }
 0x157   : > { %v2606_v38 = vpop.f32.mrf.mxu0 }
 0x158   : > { %v2670_v39 = vpop.f32.mrf.mxu1 }
 0x159   : > { %v2608_v44 = vpop.f32.mrf.mxu0 }
 0x15a   : > { %v2672_v47 = vpop.f32.mrf.mxu1 }
 0x15b   : > { %v2609_v52 = vpop.f32.mrf.mxu0 }
 0x15c   : > { %v2673_v53 = vpop.f32.mrf.mxu1 }
 0x15d   : > { %v2611_v54 = vpop.f32.mrf.mxu0 }
 0x15e   : > { %v2675_v55 = vpop.f32.mrf.mxu1 }
 0x15f   : > { %v2612_v60 = vpop.f32.mrf.mxu0 }
 0x160   : > { %v2676_v5 = vpop.f32.mrf.mxu1  ;;  %v2613_v6 = vadd.f32 %v2612_v60, %v2611_v54 }
 0x161   : > { %v2614_v7 = vpop.f32.mrf.mxu0  ;;  %v2677_v31 = vadd.f32 %v2676_v5, %v2675_v55 }
 0x162   : > { %v2678_v10 = vpop.f32.mrf.mxu1 }
 0x163   : > { %v2615_v14 = vpop.f32.mrf.mxu0  ;;  %v1277_v23 = vadd.f32 %v2677_v31, %v2613_v6 }
 0x164   : > { %v2679_v15 = vpop.f32.mrf.mxu1  ;;  %v2616_v34 = vadd.f32 %v2615_v14, %v2614_v7 }
 0x165   : > { %v2617_v19 = vpop.f32.mrf.mxu0  ;;  %v2680_v35 = vadd.f32 %v2679_v15, %v2678_v10  ;;  %v2610_v10 = vadd.f32 %v2609_v52, %v2608_v44 }
 0x166   : > { %v2681_v20 = vpop.f32.mrf.mxu1 }
 0x167   : > { %v2618_v21 = vpop.f32.mrf.mxu0  ;;  %v1280_v18 = vadd.f32 %v2680_v35, %v2616_v34 }
 0x168   : > { %v2682_v27 = vpop.f32.mrf.mxu1  ;;  %v2619_v42 = vadd.f32 %v2618_v21, %v2617_v19  ;;  %v2674_v19 = vadd.f32 %v2673_v53, %v2672_v47  ;;  %v2601_v21 = vadd.f32 %v3731_v8, %v3727_v1  ;;  %v2598_v1 = vadd.f32 %v3723_v59, %v3717_v50 }
 0x169   : > { %v2620_v28 = vpop.f32.mrf.mxu0  ;;  %v2683_v48 = vadd.f32 %v2682_v27, %v2681_v20  ;;  %v1755_v20 = vpack.c.bf16 %v1280_v18, %v1277_v23  ;;  %v2665_v27 = vadd.f32 %v3733_v9, %v3729_v2  ;;  %v2662_v9 = vadd.f32 %v3725_v0, %v3719_v56 }
 0x16a   : > { %v2684_v32 = vpop.f32.mrf.mxu1 }
 0x16b   : > { %v2621_v49 = vpop.f32.mrf.mxu0  ;;  %v1285_v33 = vadd.f32 %v2683_v48, %v2619_v42  ;;  %v1801_v47 = vsel %vm1757_vm0, %v1755_v20, 0  ;;  %v1261_v42 = vadd.f32 %v2665_v27, %v2601_v21 }
 0x16c   : > { %v2685_v41 = vpop.f32.mrf.mxu1  ;;  %v2622_v58 = vadd.f32 %v2621_v49, %v2620_v28 }
 0x16d   : > { %v2686_v29 = vadd.f32 %v2685_v41, %v2684_v32  ;;  %v2703_v4 = vpop.f32.mrf.mxu0 }
 0x16e   : > { %v2767_v37 = vpop.f32.mrf.mxu1 }
 0x16f   : > { %v1288_v45 = vadd.f32 %v2686_v29, %v2622_v58  ;;  %v2704_v62 = vpop.f32.mrf.mxu0  ;;  %v2607_v29 = vadd.f32 %v2606_v38, %v2605_v25  ;;  %v2671_v58 = vadd.f32 %v2670_v39, %v2669_v36  ;;  %v2668_v38 = vadd.f32 %v3741_v24, %v3737_v17 }
 0x170   : > { %v2768_v3 = vpop.f32.mrf.mxu1  ;;  %v2705_v51 = vadd.f32 %v2704_v62, %v2703_v4 }
 0x171   : > { %v1756_v40 = vpack.c.bf16 %v1288_v45, %v1285_v33  ;;  %v2769_v7 = vadd.f32 %v2768_v3, %v2767_v37  ;;  %v2706_v14 = vpop.f32.mrf.mxu0  ;;  %v1272_v45 = vadd.f32 %v2674_v19, %v2610_v10  ;;  %v1269_v18 = vadd.f32 %v2671_v58, %v2607_v29 }
 0x172   : > { %v2770_v15 = vpop.f32.mrf.mxu1 }
 0x173   : > { %2911 = vmatprep.subr.msk.bf16.mxu0 %vm1757_vm0, %v1756_v40  ;;  %v1804_v41 = vsel %vm1757_vm0, %v1756_v40, 0  ;;  %v1679_v54 = vadd.f32 %v2769_v7, %v2705_v51  ;;  %v2707_v55 = vpop.f32.mrf.mxu0  ;;  %v2604_v51 = vadd.f32 %v3739_v22, %v3735_v12  ;;  %v1754_v39 = vpack.c.bf16 %v1272_v45, %v1269_v18 }
 0x174   : > { %2848 = vmatpush3.bf16.xpose.msra.mxu0 %v1804_v41  ;;  %v2771_v60 = vpop.f32.mrf.mxu1  ;;  %v2708_v31 = vadd.f32 %v2707_v55, %v2706_v14  ;;  %v1256_v41 = vadd.f32 %v2662_v9, %v2598_v1 }
 0x175   : > { %2912 = vmatprep.subr.msk.bf16.mxu0 %vm1757_vm0, %v1755_v20  ;;  %v2772_v4 = vadd.f32 %v2771_v60, %v2770_v15  ;;  %v2709_v37 = vpop.f32.mrf.mxu0  ;;  %v1264_v17 = vadd.f32 %v2668_v38, %v2604_v51  ;;  %v1798_v14 = vsel %vm1757_vm0, %v1754_v39, 0 }
 0x176   : > { %v2773_v3 = vpop.f32.mrf.mxu1  ;;  %v1752_v60 = vpack.c.bf16 %v1256_v41, %v3721_v57 }
 0x177   : > { %v1682_v62 = vadd.f32 %v2772_v4, %v2708_v31  ;;  %v2710_v6 = vpop.f32.mrf.mxu0  ;;  %v1753_v10 = vpack.c.bf16 %v1264_v17, %v1261_v42 }
 0x178   : > { %v2774_v23 = vpop.f32.mrf.mxu1  ;;  %v2711_v33 = vadd.f32 %v2710_v6, %v2709_v37 }
 0x179   : > { %v2775_v44 = vadd.f32 %v2774_v23, %v2773_v3  ;;  %v3746_v40 = vpack.c.bf16 %v1682_v62, %v1679_v54  ;;  %v2712_v25 = vpop.f32.mrf.mxu0  ;;  %v1795_v29 = vsel %vm1757_vm0, %v1753_v10, 0  ;;  %v1792_v23 = vsel %vm1757_vm0, %v1752_v60, 0 }
 0x17a   : > { %v2776_v36 = vpop.f32.mrf.mxu1 }
 0x17b   : > { %4080 = vst [vmem:[#allocation10_spill] sm:$0xff] %v3746_v40  ;;  %v1687_v52 = vadd.f32 %v2775_v44, %v2711_v33  ;;  %v2713_v53 = vpop.f32.mrf.mxu0 }
 0x17c   : > { %2850 = vmatpush3.bf16.xpose.msra.mxu0 %v1801_v47  ;;  %v2777_v5 = vpop.f32.mrf.mxu1  ;;  %v2714_v12 = vadd.f32 %v2713_v53, %v2712_v25 }
 0x17d   : > { %2913 = vmatprep.subr.msk.bf16.mxu0 %vm1757_vm0, %v1754_v39  ;;  %v2778_v22 = vadd.f32 %v2777_v5, %v2776_v36  ;;  %v2715_v28 = vpop.f32.mrf.mxu0  ;;  %v1789_v39 = vsel %vm1757_vm0, %v3715_v43, 0 }
 0x17e   : > { %v2779_v32 = vpop.f32.mrf.mxu1 }
 0x17f   : > { %v1690_v24 = vadd.f32 %v2778_v22, %v2714_v12  ;;  %v2716_v34 = vpop.f32.mrf.mxu0 }
 0x180   : > { %v2780_v35 = vpop.f32.mrf.mxu1  ;;  %v2717_v48 = vadd.f32 %v2716_v34, %v2715_v28  ;;  %v1786_v28 = vsel %vm1757_vm0, %v3713_v63, 0 }
 0x181   : > { %v2781_v49 = vadd.f32 %v2780_v35, %v2779_v32  ;;  %v3758_v7 = vpack.c.bf16 %v1690_v24, %v1687_v52  ;;  %v3762_v8 = vpop.f32.mrf.mxu0 }
 0x182   : > { %v3764_v2 = vpop.f32.mrf.mxu1 }
 0x183   : > { %v3769_v15 = vadd.f32 %v2781_v49, %v2717_v48  ;;  %v3771_v19 = vpop.f32.mrf.mxu0 }
 0x184   : > { %2852 = vmatpush3.bf16.xpose.msra.mxu0 %v1798_v14  ;;  %v3773_v20 = vpop.f32.mrf.mxu1 }
 0x185   : > { %2914 = vmatprep.subr.msk.bf16.mxu0 %vm1757_vm0, %v1753_v10  ;;  %v3776_v50 = vpop.f32.mrf.mxu0 }
 0x186   : > { %v3778_v59 = vpop.f32.mrf.mxu1 }
 0x187   : > { %v3780_v54 = vpop.f32.mrf.mxu0 }
 0x188   : > { %v3782_v56 = vpop.f32.mrf.mxu1 }
 0x189   : > { %v3784_v0 = vpop.f32.mrf.mxu0 }
 0x18a   : > { %v3786_v55 = vpop.f32.mrf.mxu1 }
 0x18b   : > { %v3790_v58 = vpop.f32.mrf.mxu0 }
 0x18c   : > { %2854 = vmatpush3.bf16.xpose.msra.mxu0 %v1795_v29  ;;  %v3792_v31 = vpop.f32.mrf.mxu1 }
 0x18d   : > { %2915 = vmatprep.subr.msk.bf16.mxu0 %vm1757_vm0, %v1752_v60  ;;  %v2727_v4 = vpop.f32.mrf.mxu0 }
 0x18e   : > { %v2791_v37 = vpop.f32.mrf.mxu1 }
 0x18f   : > { %v2728_v3 = vpop.f32.mrf.mxu0 }
 0x190   : > { %v2792_v45 = vpop.f32.mrf.mxu1 }
 0x191   : > { %v2730_v62 = vpop.f32.mrf.mxu0 }
 0x192   : > { %v2794_v6 = vpop.f32.mrf.mxu1 }
 0x193   : > { %v2731_v18 = vpop.f32.mrf.mxu0 }
 0x194   : > { %2856 = vmatpush3.bf16.xpose.msra.mxu0 %v1792_v23  ;;  %v2795_v57 = vpop.f32.mrf.mxu1 }
 0x195   : > { %2916 = vmatprep.subr.msk.bf16.mxu0 %vm1757_vm0, %v3715_v43  ;;  %v2733_v33 = vpop.f32.mrf.mxu0 }
 0x196   : > { %v2797_v44 = vpop.f32.mrf.mxu1 }
 0x197   : > { %v2734_v51 = vpop.f32.mrf.mxu0 }
 0x198   : > { %v2798_v25 = vpop.f32.mrf.mxu1  ;;  %v2735_v60 = vadd.f32 %v2734_v51, %v2733_v33  ;;  %v4082_v51 = vpack.c.bf16 %v3677_v61, %v3675_v46  ;;  %v2720_v46 = vadd.f32 %v3771_v19, %v3762_v8  ;;  %v2784_v61 = vadd.f32 %v3773_v20, %v3764_v2  ;;  %v4087_v20 = vld [vmem:[#allocation5_spill] sm:$0xff] }
 0x199   : > { %v2736_v36 = vpop.f32.mrf.mxu0  ;;  %v2799_v29 = vadd.f32 %v2798_v25, %v2797_v44  ;;  %v4081_v44 = vpack.c.bf16 %v3671_v30, %v3668_v13  ;;  %v2790_v13 = vadd.f32 %v3792_v31, %v3786_v55  ;;  %v4085_v55 = vld [vmem:[#allocation2_spill] sm:$0xff]  ;;  %v4088_v31 = vld [vmem:[#allocation4_spill] sm:$0xff] }
 0x19a   : > { %v2800_v38 = vpop.f32.mrf.mxu1  ;;  %v1698_v8 = vadd.f32 %v2784_v61, %v2720_v46 }
 0x19b   : > { %v2737_v47 = vpop.f32.mrf.mxu0 }
 0x19c   : > { %2858 = vmatpush3.bf16.xpose.msra.mxu0 %v1789_v39  ;;  %v2801_v52 = vpop.f32.mrf.mxu1  ;;  %v2738_v23 = vadd.f32 %v2737_v47, %v2736_v36  ;;  %v2108_v2 = vpack.c.bf16 %v1698_v8, %v3769_v15  ;;  %v4096_v15 = vld [vmem:[#allocation10_spill] sm:$0xff]  ;;  %v1903_v36 = vlaneseq }
 0x19d   : > { %2917 = vmatprep.subr.msk.bf16.mxu0 %vm1757_vm0, %v3713_v63  ;;  %v2739_v53 = vpop.f32.mrf.mxu0  ;;  %v1783_v63 = vsel %vm1757_vm0, %v3711_v16, 0  ;;  %v2802_v39 = vadd.f32 %v2801_v52, %v2800_v38 }
 0x19e   : > { %v2803_v5 = vpop.f32.mrf.mxu1  ;;  %v3853_v38 = vshrl.u32 %v1903_v36, 7  ;;  %v3856_v52 = vand.u32 127, %v1903_v36 }
 0x19f   : > { %v2740_v21 = vpop.f32.mrf.mxu0 }
 0x1a0   : > { %v2804_v27 = vpop.f32.mrf.mxu1  ;;  %v2741_v34 = vadd.f32 %v2740_v21, %v2739_v53  ;;  %v1906_v47 = vadd.s32 16, %v3853_v38  ;;  %vm1922_vm2 = vcmp.ge.s32.totalorder %v3853_v38, %v3856_v52 }
 0x1a1   : > { %v2742_v12 = vpop.f32.mrf.mxu0  ;;  %v2805_v35 = vadd.f32 %v2804_v27, %v2803_v5 }
 0x1a2   : > { %v2806_v22 = vpop.f32.mrf.mxu1  ;;  %vm1924_vm1 = vcmp.ge.s32.totalorder %v1906_v47, %v3856_v52 }
 0x1a3   : > { %v2743_v32 = vpop.f32.mrf.mxu0 }
 0x1a4   : > { %2860 = vmatpush3.bf16.xpose.msra.mxu0 %v1786_v28  ;;  %v2807_v17 = vpop.f32.mrf.mxu1  ;;  %v2744_v49 = vadd.f32 %v2743_v32, %v2742_v12  ;;  %v1727_v28 = vadd.f32 %v2805_v35, %v2741_v34  ;;  %v2729_v32 = vadd.f32 %v2728_v3, %v2727_v4  ;;  %v2787_v4 = vadd.f32 %v3782_v56, %v3778_v59 }
 0x1a5   : > { %2918 = vmatprep.subr.msk.bf16.mxu0 %vm1757_vm0, %v3711_v16  ;;  %v2745_v43 = vpop.f32.mrf.mxu0  ;;  %v2808_v1 = vadd.f32 %v2807_v17, %v2806_v22  ;;  %v2793_v17 = vadd.f32 %v2792_v45, %v2791_v37  ;;  %v2726_v37 = vadd.f32 %v3790_v58, %v3784_v0  ;;  %v4083_v56 = vpack.c.bf16 %v3683_v26, %v3681_v11  ;;  %v4084_v0 = vld [vmem:[#allocation3_spill] sm:$0xff]  ;;  %v4091_v26 = vld [vmem:[#allocation6_spill] sm:$0xff] }
 0x1a6   : > { %v2809_v24 = vpop.f32.mrf.mxu1  ;;  %v4086_v58 = vpack.c.bf16 %v4084_v0, %v4085_v55  ;;  %v4090_v11 = vld [vmem:[#allocation7_spill] sm:$0xff]  ;;  %v1907_v34 = vadd.s32 24, %v3853_v38 }
 0x1a7   : > { %v2746_v42 = vpop.f32.mrf.mxu0  ;;  %v1730_v5 = vadd.f32 %v2808_v1, %v2744_v49  ;;  %v1711_v30 = vadd.f32 %v2793_v17, %v2729_v32  ;;  %v1706_v59 = vadd.f32 %v2790_v13, %v2726_v37 }
 0x1a8   : > { %v2810_v48 = vpop.f32.mrf.mxu1  ;;  %v2747_v9 = vadd.f32 %v2746_v42, %v2745_v43  ;;  %v2732_v43 = vadd.f32 %v2731_v18, %v2730_v62  ;;  %v1719_v42 = vadd.f32 %v2799_v29, %v2735_v60  ;;  %v4089_v62 = vpack.c.bf16 %v4087_v20, %v4088_v31  ;;  %v4093_v18 = vld [vmem:[#allocation9_spill] sm:$0xff] }
 0x1a9   : > { %v2811_v10 = vadd.f32 %v2810_v48, %v2809_v24  ;;  %v2748_v14 = vpop.f32.mrf.mxu0  ;;  %v2796_v24 = vadd.f32 %v2795_v57, %v2794_v6  ;;  %v1722_v48 = vadd.f32 %v2802_v39, %v2738_v23  ;;  %v2112_v33 = vpack.c.bf16 %v1730_v5, %v1727_v28  ;;  %v4094_v57 = vld [vmem:[#allocation8_spill] sm:$0xff] }
 0x1aa   : > { %v2812_v41 = vpop.f32.mrf.mxu1  ;;  %v4092_v6 = vpack.c.bf16 %v4090_v11, %v4091_v26  ;;  %v4095_v25 = vpack.c.bf16 %v4093_v18, %v4094_v57  ;;  %vm1925_vm3 = vcmp.ge.s32.totalorder %v1907_v34, %v3856_v52  ;;  %v1910_v23 = vadd.s32 48, %v3853_v38 }
 0x1ab   : > { %v2749_v40 = vpop.f32.mrf.mxu0  ;;  %v1735_v21 = vadd.f32 %v2811_v10, %v2747_v9  ;;  %v1714_v3 = vadd.f32 %v2796_v24, %v2732_v43  ;;  %v2111_v45 = vpack.c.bf16 %v1722_v48, %v1719_v42  ;;  %v1909_v39 = vadd.s32 40, %v3853_v38 }
 0x1ac   : > { %2862 = vmatpush3.bf16.xpose.msra.mxu0 %v1783_v63  ;;  %v2813_v53 = vpop.f32.mrf.mxu1  ;;  %v2750_v27 = vadd.f32 %v2749_v40, %v2748_v14  ;;  %v2723_v40 = vadd.f32 %v3780_v54, %v3776_v50  ;;  %v1908_v14 = vadd.s32 32, %v3853_v38  ;;  %vm1928_vm6 = vcmp.ge.s32.totalorder %v1910_v23, %v3856_v52 }
 0x1ad   : > { %v2814_v12 = vadd.f32 %v2813_v53, %v2812_v41  ;;  %v2110_v54 = vpack.c.bf16 %v1714_v3, %v1711_v30  ;;  %vm1927_vm7 = vcmp.ge.s32.totalorder %v1909_v39, %v3856_v52  ;;  %v1914_v43 = vadd.s32 80, %v3853_v38 }
 0x1ae   : > { %v1703_v50 = vadd.f32 %v2787_v4, %v2723_v40  ;;  %vm1926_vm5 = vcmp.ge.s32.totalorder %v1908_v14, %v3856_v52  ;;  %v1913_v24 = vadd.s32 72, %v3853_v38  ;;  %v1918_v30 = vadd.s32 112, %v3853_v38 }
 0x1af   : > { %v1738_v22 = vadd.f32 %v2814_v12, %v2750_v27  ;;  %v1912_v27 = vadd.s32 64, %v3853_v38  ;;  %vm1932_vm10 = vcmp.ge.s32.totalorder %v1914_v43, %v3856_v52  ;;  %v1917_v3 = vadd.s32 104, %v3853_v38 }
 0x1b0   : > { %v2109_v19 = vpack.c.bf16 %v1706_v59, %v1703_v50  ;;  %vm1931_vm11 = vcmp.ge.s32.totalorder %v1913_v24, %v3856_v52  ;;  %vm1936_vm14 = vcmp.ge.s32.totalorder %v1918_v30, %v3856_v52  ;;  %v1919_v59 = vadd.s32 120, %v3853_v38 }
 0x1b1   : > { %v2113_v16 = vpack.c.bf16 %v1738_v22, %v1735_v21  ;;  %v1911_v21 = vadd.s32 56, %v3853_v38  ;;  %vm1930_vm9 = vcmp.ge.s32.totalorder %v1912_v27, %v3856_v52  ;;  %vm1935_vm15 = vcmp.ge.s32.totalorder %v1917_v3, %v3856_v52 }
 0x1b3   : > { %2864 = vmatmul.mubr.msk.bf16.vlgmr.msra.gmra.mxu0 %vm1757_vm0, %v4081_v44  ;;  %2879 = vmatprep.subr.bf16.mxu1 %v2113_v16  ;;  %vm1929_vm8 = vcmp.ge.s32.totalorder %v1911_v21, %v3856_v52  ;;  %v1915_v44 = vadd.s32 88, %v3853_v38 }
 0x1b4   : > { %2867 = vmatprep.mubr.msk.bf16.mxu0 %vm1757_vm0, %v4082_v51  ;;  %2880 = vmatpush3.bf16.msra.mxu1 %v2113_v16  ;;  %v1916_v51 = vadd.s32 96, %v3853_v38 }
 0x1b5   : > { %2881 = vmatprep.subr.bf16.mxu1 %v2112_v33  ;;  %vm1933_vm12 = vcmp.ge.s32.totalorder %v1915_v44, %v3856_v52 }
 0x1b6   : > { %vm1934_vm13 = vcmp.ge.s32.totalorder %v1916_v51, %v3856_v52 }
 0x1b8   : > { %2882 = vmatpush3.bf16.msra.mxu1 %v2112_v33 }
 0x1b9   : > { %2883 = vmatprep.subr.bf16.mxu1 %v2111_v45 }
 0x1bb   : > { %2868 = vmatmul.mubr.msk.bf16.gmra.mxu0 %vm1757_vm0, %v4083_v56 }
 0x1bc   : > { %2871 = vmatprep.mubr.msk.bf16.mxu0 %vm1757_vm0, %v4086_v58  ;;  %2884 = vmatpush3.bf16.msra.mxu1 %v2111_v45 }
 0x1bd   : > { %2885 = vmatprep.subr.bf16.mxu1 %v2110_v54 }
 0x1c0   : > { %2886 = vmatpush3.bf16.msra.mxu1 %v2110_v54 }
 0x1c1   : > { %2887 = vmatprep.subr.bf16.mxu1 %v2109_v19 }
 0x1c3   : > { %2872 = vmatmul.mubr.msk.bf16.gmra.mxu0 %vm1757_vm0, %v4089_v62 }
 0x1c4   : > { %2875 = vmatprep.mubr.msk.bf16.mxu0 %vm1757_vm0, %v4092_v6  ;;  %2888 = vmatpush3.bf16.msra.mxu1 %v2109_v19 }
 0x1c5   : > { %2889 = vmatprep.subr.bf16.mxu1 %v2108_v2 }
 0x1c8   : > { %2890 = vmatpush3.bf16.msra.mxu1 %v2108_v2 }
 0x1c9   : > { %2891 = vmatprep.subr.bf16.mxu1 %v3758_v7 }
 0x1cb   : > { %2876 = vmatmul.mubr.msk.bf16.gmra.mxu0 %vm1757_vm0, %v4095_v25 }
 0x1cc   : > { %2892 = vmatpush3.bf16.msra.mxu1 %v3758_v7  ;;  %v1905_v7 = vadd.s32 8, %v3853_v38 }
 0x1cd   : > { %2893 = vmatprep.subr.bf16.mxu1 %v4096_v15 }
 0x1ce   : > { %vm1923_vm4 = vcmp.ge.s32.totalorder %v1905_v7, %v3856_v52 }
 0x1d0   : > { %2894 = vmatpush3.bf16.msra.mxu1 %v4096_v15 }
 0x273   : > { %v2865_v35 = vpop.f32.mrf.mxu0 }
 0x274   : > { %v3863_v49 = vsel %vm1924_vm1, %v2865_v35, -1e+30  ;;  %vm1937_vm1 = vcmp.ge.s32.totalorder %v1919_v59, %v3856_v52 }
 0x275   : > { %1958 = vmax.xlane.f32.xlu1 %v3863_v49  ;;  %v1840_v1 = vpop.f32.mrf.mxu0 }
 0x276   : > { %v3867_v9 = vsel %vm1922_vm2, %v1840_v1, -1e+30 }
 0x277   : > { %1954 = vmax.xlane.f32.xlu0 %v3867_v9  ;;  %v2866_v10 = vpop.f32.mrf.mxu0 }
 0x278   : > { %v3872_v41 = vsel %vm1925_vm3, %v2866_v10, -1e+30 }
 0x279   : > { %1960 = vmax.xlane.f32.xlu1 %v3872_v41  ;;  %v1843_v63 = vpop.f32.mrf.mxu0 }
 0x27a   : > { %v3875_v60 = vsel %vm1923_vm4, %v1843_v63, -1e+30 }
 0x27b   : > { %1956 = vmax.xlane.f32.xlu0 %v3875_v60  ;;  %v2869_v29 = vpop.f32.mrf.mxu0 }
 0x27c   : > { %v3888_v22 = vsel %vm1928_vm6, %v2869_v29, -1e+30 }
 0x27d   : > { %v1856_v28 = vpop.f32.mrf.mxu0 }
 0x27e   : > { %v3881_v53 = vsel %vm1926_vm5, %v1856_v28, -1e+30 }
 0x27f   : > { %1962 = vmax.xlane.f32.xlu0 %v3881_v53  ;;  %v2870_v5 = vpop.f32.mrf.mxu0 }
 0x280   : > { %v3898_v48 = vsel %vm1929_vm8, %v2870_v5, -1e+30 }
 0x281   : > { %v1859_v12 = vpop.f32.mrf.mxu0 }
 0x282   : > { %v3890_v32 = vsel %vm1927_vm7, %v1859_v12, -1e+30 }
 0x283   : > { %1966 = vmax.xlane.f32.xlu0 %v3888_v22  ;;  %1964 = vmax.xlane.f32.xlu1 %v3890_v32  ;;  %v2873_v17 = vpop.f32.mrf.mxu0 }
 0x284   : > { %v3908_v4 = vsel %vm1932_vm10, %v2873_v17, -1e+30 }
 0x285   : > { %v1872_v42 = vpop.f32.mrf.mxu0 }
 0x286   : > { %v3900_v16 = vsel %vm1930_vm9, %v1872_v42, -1e+30 }
 0x287   : > { %1968 = vmax.xlane.f32.xlu1 %v3898_v48  ;;  %1970 = vmax.xlane.f32.xlu0 %v3900_v16  ;;  %v2874_v33 = vpop.f32.mrf.mxu0 }
 0x288   : > { %v3918_v46 = vsel %vm1933_vm12, %v2874_v33, -1e+30 }
 0x289   : > { %v1875_v40 = vpop.f32.mrf.mxu0 }
 0x28a   : > { %v3910_v37 = vsel %vm1931_vm11, %v1875_v40, -1e+30 }
 0x28b   : > { %1974 = vmax.xlane.f32.xlu0 %v3908_v4  ;;  %1972 = vmax.xlane.f32.xlu1 %v3910_v37  ;;  %v2877_v13 = vpop.f32.mrf.mxu0 }
 0x28c   : > { %v3927_v56 = vsel %vm1936_vm14, %v2877_v13, -1e+30 }
 0x28d   : > { %v1888_v45 = vpop.f32.mrf.mxu0 }
 0x28e   : > { %v3920_v61 = vsel %vm1934_vm13, %v1888_v45, -1e+30 }
 0x28f   : > { %1976 = vmax.xlane.f32.xlu1 %v3918_v46  ;;  %1978 = vmax.xlane.f32.xlu0 %v3920_v61  ;;  %v2878_v50 = vpop.f32.mrf.mxu0 }
 0x290   : > { %v3934_v55 = vsel %vm1937_vm1, %v2878_v50, -1e+30 }
 0x291   : > { %v1891_v54 = vpop.f32.mrf.mxu0 }
 0x292   : > { %v3929_v0 = vsel %vm1935_vm15, %v1891_v54, -1e+30 }
 0x293   : > { %1982 = vmax.xlane.f32.xlu0 %v3927_v56  ;;  %1980 = vmax.xlane.f32.xlu1 %v3929_v0 }
 0x297   : > { %1984 = vmax.xlane.f32.xlu1 %v3934_v55 }
 0x2fe   : > { %v1959_v58 = vpop.xlane.xlu1 %1958 }
 0x2ff   : > { %v1988_v8 = vsub.f32 %v3863_v49, %v1959_v58 }
 0x300   : > { %v1955_v19 = vpop.xlane.xlu0 %1954 }
 0x301   : > { %v1986_v2 = vsub.f32 %v3867_v9, %v1955_v19  ;;  %v2006_v62 = vmul.f32 1.442695, %v1988_v8 }
 0x302   : > { %v1961_v20 = vpop.xlane.xlu1 %1960 }
 0x303   : > { %v2002_v31 = vmul.f32 1.442695, %v1986_v2  ;;  %v1989_v11 = vsub.f32 %v3872_v41, %v1961_v20 }
 0x304   : > { %v1957_v26 = vpop.xlane.xlu0 %1956 }
 0x305   : > { %3071 = vpow2.f32 %v2002_v31  ;;  %v1987_v6 = vsub.f32 %v3875_v60, %v1957_v26  ;;  %v2008_v57 = vmul.f32 1.442695, %v1989_v11 }
 0x306   : > { %3073 = vpow2.f32 %v2006_v62 }
 0x307   : > { %v2004_v18 = vmul.f32 1.442695, %v1987_v6 }
 0x308   : > { %v1963_v25 = vpop.xlane.xlu0 %1962 }
 0x309   : > { %3075 = vpow2.f32 %v2004_v18  ;;  %v1990_v15 = vsub.f32 %v3881_v53, %v1963_v25 }
 0x30a   : > { %3077 = vpow2.f32 %v2008_v57 }
 0x30b   : > { %v2010_v36 = vmul.f32 1.442695, %v1990_v15 }
 0x30c   : > { %v1967_v38 = vpop.xlane.xlu0 %1966  ;;  %v1965_v47 = vpop.xlane.xlu1 %1964 }
 0x30d   : > { %3079 = vpow2.f32 %v2010_v36  ;;  %v1992_v52 = vsub.f32 %v3888_v22, %v1967_v38  ;;  %v1991_v34 = vsub.f32 %v3890_v32, %v1965_v47 }
 0x30f   : > { %v2014_v35 = vmul.f32 1.442695, %v1992_v52  ;;  %v2012_v7 = vmul.f32 1.442695, %v1991_v34 }
 0x310   : > { %v1969_v49 = vpop.xlane.xlu1 %1968  ;;  %v1971_v1 = vpop.xlane.xlu0 %1970 }
 0x311   : > { %3081 = vpow2.f32 %v2014_v35  ;;  %v1993_v9 = vsub.f32 %v3898_v48, %v1969_v49  ;;  %v1994_v10 = vsub.f32 %v3900_v16, %v1971_v1 }
 0x312   : > { %v3946_v14 = vpop.eup %3071  ;;  %3083 = vpow2.f32 %v2012_v7 }
 0x313   : > { %v2016_v41 = vmul.f32 1.442695, %v1993_v9  ;;  %v2018_v63 = vmul.f32 1.442695, %v1994_v10  ;;  %2034 = vadd.xlane.f32.xlu0 %v3946_v14  ;;  %v3949_v23 = vpop.eup %3073 }
 0x314   : > { %v1975_v60 = vpop.xlane.xlu0 %1974  ;;  %v1973_v29 = vpop.xlane.xlu1 %1972 }
 0x315   : > { %3085 = vpow2.f32 %v2016_v41  ;;  %v1996_v39 = vsub.f32 %v3908_v4, %v1975_v60  ;;  %v1995_v28 = vsub.f32 %v3910_v37, %v1973_v29 }
 0x316   : > { %v3953_v53 = vpop.eup %3075  ;;  %3087 = vpow2.f32 %v2018_v63 }
 0x317   : > { %v2022_v5 = vmul.f32 1.442695, %v1996_v39  ;;  %v2020_v21 = vmul.f32 1.442695, %v1995_v28  ;;  %2038 = vadd.xlane.f32.xlu0 %v3949_v23  ;;  %2036 = vadd.xlane.f32.xlu1 %v3953_v53  ;;  %v3957_v22 = vpop.eup %3077 }
 0x318   : > { %v1977_v27 = vpop.xlane.xlu1 %1976  ;;  %v1979_v12 = vpop.xlane.xlu0 %1978 }
 0x319   : > { %3089 = vpow2.f32 %v2022_v5  ;;  %v1997_v32 = vsub.f32 %v3918_v46, %v1977_v27  ;;  %v1998_v17 = vsub.f32 %v3920_v61, %v1979_v12 }
 0x31a   : > { %v3961_v43 = vpop.eup %3079  ;;  %3091 = vpow2.f32 %v2020_v21 }
 0x31b   : > { %v2024_v24 = vmul.f32 1.442695, %v1997_v32  ;;  %v2026_v42 = vmul.f32 1.442695, %v1998_v17  ;;  %2042 = vadd.xlane.f32.xlu0 %v3961_v43  ;;  %2040 = vadd.xlane.f32.xlu1 %v3957_v22 }
 0x31c   : > { %v1983_v48 = vpop.xlane.xlu0 %1982  ;;  %v1981_v16 = vpop.xlane.xlu1 %1980 }
 0x31d   : > { %3093 = vpow2.f32 %v2024_v24  ;;  %v2000_v33 = vsub.f32 %v3927_v56, %v1983_v48  ;;  %v1999_v44 = vsub.f32 %v3929_v0, %v1981_v16 }
 0x31e   : > { %v3967_v51 = vpop.eup %3081  ;;  %3095 = vpow2.f32 %v2026_v42 }
 0x31f   : > { %v3969_v40 = vpop.eup %3083  ;;  %v2030_v4 = vmul.f32 1.442695, %v2000_v33  ;;  %v2028_v37 = vmul.f32 1.442695, %v1999_v44  ;;  %2046 = vadd.xlane.f32.xlu0 %v3967_v51 }
 0x320   : > { %2044 = vadd.xlane.f32.xlu1 %v3969_v40  ;;  %v1985_v13 = vpop.xlane.xlu1 %1984 }
 0x321   : > { %3097 = vpow2.f32 %v2030_v4  ;;  %v2001_v30 = vsub.f32 %v3934_v55, %v1985_v13 }
 0x322   : > { %v3974_v3 = vpop.eup %3085  ;;  %3099 = vpow2.f32 %v2028_v37 }
 0x323   : > { %v3976_v45 = vpop.eup %3087  ;;  %v2032_v46 = vmul.f32 1.442695, %v2001_v30 }
 0x324   : > { %2050 = vadd.xlane.f32.xlu0 %v3976_v45  ;;  %2048 = vadd.xlane.f32.xlu1 %v3974_v3 }
 0x325   : > { %3101 = vpow2.f32 %v2032_v46 }
 0x326   : > { %v3980_v61 = vpop.eup %3089 }
 0x327   : > { %v3982_v50 = vpop.eup %3091 }
 0x328   : > { %2054 = vadd.xlane.f32.xlu0 %v3980_v61  ;;  %2052 = vadd.xlane.f32.xlu1 %v3982_v50 }
 0x32a   : > { %v3986_v59 = vpop.eup %3093 }
 0x32b   : > { %v3988_v54 = vpop.eup %3095 }
 0x32c   : > { %2058 = vadd.xlane.f32.xlu0 %v3988_v54  ;;  %2056 = vadd.xlane.f32.xlu1 %v3986_v59 }
 0x32e   : > { %v3992_v56 = vpop.eup %3097 }
 0x32f   : > { %v3994_v0 = vpop.eup %3099 }
 0x330   : > { %2062 = vadd.xlane.f32.xlu0 %v3992_v56  ;;  %2060 = vadd.xlane.f32.xlu1 %v3994_v0 }
 0x332   : > { %v3998_v55 = vpop.eup %3101 }
 0x334   : > { %2064 = vadd.xlane.f32.xlu1 %v3998_v55 }
 0x39c   : > { %v2035_v58 = vpop.xlane.xlu0 %2034 }
 0x39d   : > { %3103 = vrcp.f32 %v2035_v58 }
 0x3a0   : > { %v2039_v8 = vpop.xlane.xlu0 %2038  ;;  %v2037_v19 = vpop.xlane.xlu1 %2036 }
 0x3a1   : > { %3105 = vrcp.f32 %v2037_v19 }
 0x3a2   : > { %3107 = vrcp.f32 %v2039_v8 }
 0x3a4   : > { %v2043_v2 = vpop.xlane.xlu0 %2042  ;;  %v2041_v20 = vpop.xlane.xlu1 %2040 }
 0x3a5   : > { %3109 = vrcp.f32 %v2041_v20 }
 0x3a6   : > { %3111 = vrcp.f32 %v2043_v2 }
 0x3a8   : > { %v2047_v31 = vpop.xlane.xlu0 %2046 }
 0x3a9   : > { %v2045_v62 = vpop.xlane.xlu1 %2044 }
 0x3aa   : > { %3113 = vrcp.f32 %v2045_v62  ;;  %v3104_v11 = vpop.eup %3103 }
 0x3ab   : > { %3115 = vrcp.f32 %v2047_v31  ;;  %v2082_v57 = vmul.f32 %v3104_v11, %v3946_v14 }
 0x3ad   : > { %v2051_v26 = vpop.xlane.xlu0 %2050  ;;  %v2049_v6 = vpop.xlane.xlu1 %2048 }
 0x3ae   : > { %v3106_v18 = vpop.eup %3105  ;;  %3117 = vrcp.f32 %v2049_v6 }
 0x3af   : > { %v2083_v25 = vmul.f32 %v3106_v18, %v3953_v53  ;;  %v3108_v15 = vpop.eup %3107  ;;  %3119 = vrcp.f32 %v2051_v26 }
 0x3b0   : > { %v2084_v34 = vmul.f32 %v3108_v15, %v3949_v23 }
 0x3b1   : > { %v2055_v36 = vpop.xlane.xlu0 %2054  ;;  %v2053_v38 = vpop.xlane.xlu1 %2052  ;;  %v2098_v47 = vpack.c.bf16 %v2083_v25, %v2082_v57 }
 0x3b2   : > { %v3110_v52 = vpop.eup %3109  ;;  %3121 = vrcp.f32 %v2053_v38 }
 0x3b3   : > { %2895 = vmatprep.mubr.bf16.mxu1 %v2098_v47  ;;  %v2085_v35 = vmul.f32 %v3110_v52, %v3957_v22  ;;  %v3112_v7 = vpop.eup %3111  ;;  %3123 = vrcp.f32 %v2055_v36 }
 0x3b4   : > { %v2086_v14 = vmul.f32 %v3112_v7, %v3961_v43 }
 0x3b5   : > { %v2059_v49 = vpop.xlane.xlu0 %2058  ;;  %v2057_v1 = vpop.xlane.xlu1 %2056  ;;  %v2099_v9 = vpack.c.bf16 %v2085_v35, %v2084_v34 }
 0x3b6   : > { %3125 = vrcp.f32 %v2057_v1 }
 0x3b7   : > { %v3114_v10 = vpop.eup %3113  ;;  %2896 = vmatmul.mubr.bf16.vlgmr.msra.gmra.mxu1 %v2099_v9  ;;  %3127 = vrcp.f32 %v2059_v49 }
 0x3b8   : > { %v2087_v41 = vmul.f32 %v3114_v10, %v3969_v40  ;;  %v3116_v29 = vpop.eup %3115 }
 0x3b9   : > { %v2063_v63 = vpop.xlane.xlu0 %2062  ;;  %v2061_v60 = vpop.xlane.xlu1 %2060  ;;  %v2088_v53 = vmul.f32 %v3116_v29, %v3967_v51 }
 0x3ba   : > { %v2100_v39 = vpack.c.bf16 %v2087_v41, %v2086_v14  ;;  %3129 = vrcp.f32 %v2061_v60 }
 0x3bb   : > { %v3118_v23 = vpop.eup %3117  ;;  %3131 = vrcp.f32 %v2063_v63 }
 0x3bc   : > { %2899 = vmatprep.mubr.bf16.mxu1 %v2100_v39  ;;  %v2089_v5 = vmul.f32 %v3118_v23, %v3974_v3  ;;  %v3120_v21 = vpop.eup %3119 }
 0x3bd   : > { %v2065_v28 = vpop.xlane.xlu1 %2064  ;;  %v2090_v22 = vmul.f32 %v3120_v21, %v3976_v45 }
 0x3be   : > { %3133 = vrcp.f32 %v2065_v28  ;;  %v2101_v27 = vpack.c.bf16 %v2089_v5, %v2088_v53 }
 0x3bf   : > { %v3122_v12 = vpop.eup %3121 }
 0x3c0   : > { %2900 = vmatmul.mubr.bf16.gmra.mxu1 %v2101_v27  ;;  %v2091_v32 = vmul.f32 %v3122_v12, %v3982_v50  ;;  %v3124_v17 = vpop.eup %3123 }
 0x3c1   : > { %v2092_v42 = vmul.f32 %v3124_v17, %v3980_v61 }
 0x3c2   : > { %v2102_v43 = vpack.c.bf16 %v2091_v32, %v2090_v22 }
 0x3c3   : > { %v3126_v24 = vpop.eup %3125 }
 0x3c4   : > { %2903 = vmatprep.mubr.bf16.mxu1 %v2102_v43  ;;  %v2093_v48 = vmul.f32 %v3126_v24, %v3986_v59  ;;  %v3128_v16 = vpop.eup %3127 }
 0x3c5   : > { %v2094_v40 = vmul.f32 %v3128_v16, %v3988_v54 }
 0x3c6   : > { %v2103_v33 = vpack.c.bf16 %v2093_v48, %v2092_v42 }
 0x3c7   : > { %v3130_v44 = vpop.eup %3129 }
 0x3c8   : > { %v3132_v51 = vpop.eup %3131  ;;  %2904 = vmatmul.mubr.bf16.gmra.mxu1 %v2103_v33  ;;  %v2095_v4 = vmul.f32 %v3130_v44, %v3994_v0 }
 0x3c9   : > { %v2096_v30 = vmul.f32 %v3132_v51, %v3992_v56 }
 0x3ca   : > { %v2104_v13 = vpack.c.bf16 %v2095_v4, %v2094_v40 }
 0x3cb   : > { %v3134_v37 = vpop.eup %3133 }
 0x3cc   : > { %v2097_v3 = vmul.f32 %v3134_v37, %v3998_v55  ;;  %2907 = vmatprep.mubr.bf16.mxu1 %v2104_v13 }
 0x3ce   : > { %v2105_v45 = vpack.c.bf16 %v2097_v3, %v2096_v30 }
 0x3d0   : > { %2908 = vmatmul.mubr.bf16.gmra.mxu1 %v2105_v45 }
 0x477   : > { %v2897_v46 = vpop.f32.mrf.mxu1 }
 0x478   : > { %2213 = vst.msk [vmem:[%s4021_s26 + $0x10] sm:$0xff] %vm1757_vm0, %v2897_v46 }
 0x479   : > { %v2148_v61 = vpop.f32.mrf.mxu1 }
 0x47a   : > { %2211 = vst.msk [vmem:[%s4021_s26] sm:$0xff] %vm1757_vm0, %v2148_v61 }
 0x47b   : > { %v2898_v50 = vpop.f32.mrf.mxu1 }
 0x47c   : > { %2214 = vst.msk [vmem:[%s4021_s26 + $0x18] sm:$0xff] %vm1757_vm0, %v2898_v50 }
 0x47d   : > { %v2151_v59 = vpop.f32.mrf.mxu1 }
 0x47e   : > { %2212 = vst.msk [vmem:[%s4021_s26 + $0x8] sm:$0xff] %vm1757_vm0, %v2151_v59 }
 0x480   : > { %v2901_v54 = vpop.f32.mrf.mxu1 }
 0x481   : > { %2217 = vst.msk [vmem:[%s4021_s26 + $0x30] sm:$0xff] %vm1757_vm0, %v2901_v54 }
 0x482   : > { %v2164_v56 = vpop.f32.mrf.mxu1 }
 0x483   : > { %2215 = vst.msk [vmem:[%s4021_s26 + $0x20] sm:$0xff] %vm1757_vm0, %v2164_v56 }
 0x484   : > { %v2902_v0 = vpop.f32.mrf.mxu1 }
 0x485   : > { %2218 = vst.msk [vmem:[%s4021_s26 + $0x38] sm:$0xff] %vm1757_vm0, %v2902_v0 }
 0x486   : > { %v2167_v55 = vpop.f32.mrf.mxu1 }
 0x487   : > { %2216 = vst.msk [vmem:[%s4021_s26 + $0x28] sm:$0xff] %vm1757_vm0, %v2167_v55 }
 0x488   : > { %v2905_v58 = vpop.f32.mrf.mxu1 }
 0x489   : > { %2221 = vst.msk [vmem:[%s4021_s26 + $0x50] sm:$0xff] %vm1757_vm0, %v2905_v58 }
 0x48a   : > { %v2180_v8 = vpop.f32.mrf.mxu1 }
 0x48b   : > { %2219 = vst.msk [vmem:[%s4021_s26 + $0x40] sm:$0xff] %vm1757_vm0, %v2180_v8 }
 0x48c   : > { %v2906_v19 = vpop.f32.mrf.mxu1 }
 0x48d   : > { %2222 = vst.msk [vmem:[%s4021_s26 + $0x58] sm:$0xff] %vm1757_vm0, %v2906_v19 }
 0x48e   : > { %v2183_v2 = vpop.f32.mrf.mxu1 }
 0x48f   : > { %2220 = vst.msk [vmem:[%s4021_s26 + $0x48] sm:$0xff] %vm1757_vm0, %v2183_v2 }
 0x490   : > { %v2909_v20 = vpop.f32.mrf.mxu1 }
 0x491   : > { %2225 = vst.msk [vmem:[%s4021_s26 + $0x70] sm:$0xff] %vm1757_vm0, %v2909_v20 }
 0x492   : > { %v2196_v31 = vpop.f32.mrf.mxu1 }
 0x493   : > { %2223 = vst.msk [vmem:[%s4021_s26 + $0x60] sm:$0xff] %vm1757_vm0, %v2196_v31 }
 0x494   : > { %v2910_v62 = vpop.f32.mrf.mxu1 }
 0x495   : > { %2226 = vst.msk [vmem:[%s4021_s26 + $0x78] sm:$0xff] %vm1757_vm0, %v2910_v62 }
 0x496   : > { %v2199_v11 = vpop.f32.mrf.mxu1 }
 0x497   : > { %2224 = vst.msk [vmem:[%s4021_s26 + $0x68] sm:$0xff] %vm1757_vm0, %v2199_v11 }
 0x498 PF: > { %s14_s15 = sadd.s32 1, %s3141_s15  }
 0x499   : > { %p11_p4 = scmp.ge.s32.totalorder %s14_s15, 4  }
 0x49b   :  { %13 = sbr.rel (!%p11_p4) target bundleno = 1 (0x1), region = 66 }

</bundles_post_ra>
